<compile_context>
chip_gen: v5e
topology: v5e:2x2
jax: 0.10.0
libtpu: 0.0.40
codegen_flags: <defaults>
</compile_context>

<pallas_src>
import functools

import jax
import jax.numpy as jnp
from jax import lax
from jax.experimental import pallas as pl
from jax.experimental.pallas import tpu as pltpu


def _round_up(x, m):
    return (x + m - 1) // m * m


def _resblock_kernel(xflat_ref,                 # (C, LX)  padded input, flattened spatial
                     mask_ref,                  # (1, LA)  validity mask for stage-1 plane
                     w1_ref, w2_ref,            # (3, 3, Co, Ci) each (HWOI)
                     s1_ref, t1_ref,            # (C, 1)   folded conv1-bias + CAFM1 affine
                     s2_ref, t2_ref,            # (C, 1)   folded conv2-bias + CAFM2 + res_scale affine
                     out_ref,                   # (C, LO)  LO = round_up(H*(W+4), 128)
                     act_ref,                   # scratch (C, LA) f32
                     *, W):
    Wp = W + 4                       # row stride of the flattened padded image
    C, LA = act_ref.shape
    LO = out_ref.shape[-1]

    # Hoisted parameter loads (once per grid step).
    mask = mask_ref[...]
    s1, t1 = s1_ref[...], t1_ref[...]
    s2, t2 = s2_ref[...], t2_ref[...]

    # ---- stage 1: conv1 + (bias & CAFM#num folded affine) + ReLU + zero-pad ----
    # Extended plane covers (H+2) x Wp flat positions; valid region is rows 1..H,
    # cols 1..W of the plane; everything else is zeroed by `mask` (this IS
    # conv2's zero padding of the post-ReLU activation, plus wrap-around junk).
    acc1 = jnp.zeros((C, LA), jnp.float32)
    for dh in range(3):
        for dw in range(3):
            xs = xflat_ref[:, pl.ds(dh * Wp + dw, LA)]            # (C, LA)
            acc1 = acc1 + jnp.dot(w1_ref[dh, dw], xs,
                                  preferred_element_type=jnp.float32)
    y = acc1 * s1 + t1                                            # bias + CAFM folded
    y = jnp.maximum(y, 0.0)                                       # ReLU
    act_ref[...] = y * mask

    # ---- stage 2: conv2 + (bias & CAFM#num & res_scale folded) + residual ------
    acc2 = jnp.zeros((C, LO), jnp.float32)
    for dh in range(3):
        for dw in range(3):
            a = act_ref[:, pl.ds(dh * Wp + dw, LO)]               # (C, LO)
            acc2 = acc2 + jnp.dot(w2_ref[dh, dw], a,
                                  preferred_element_type=jnp.float32)
    x_res = xflat_ref[:, pl.ds(2 * Wp + 2, LO)]                   # original input, same layout
    out_ref[...] = (acc2 * s2 + t2 + x_res).astype(out_ref.dtype)


def resblock_pallas(x_nchw, params, num, *, res_scale=1.0):
    """ResBlock forward. x_nchw: (N, C, H, W). num: segment index (Python int)."""
    N, C, H, W = x_nchw.shape
    Hp, Wp = H + 4, W + 4
    # All flattened plane lengths rounded to multiples of 128 for lane-dense
    # loads/stores; tail lanes hold junk that never reaches the final output.
    LO = _round_up(H * Wp, 128)                  # stage-2 output plane
    LA = _round_up(2 * Wp + 2 + LO, 128)         # stage-1 extended plane (covers stage-2 taps)
    LX = _round_up(2 * Wp + 2 + LA, 128)         # flattened padded input (covers stage-1 taps)

    # Glue: NCHW already has channels leading -> just pad spatially and flatten.
    xpad = jnp.pad(x_nchw, ((0, 0), (0, 0), (2, 2), (2, 2)))      # (N, C, Hp, Wp)
    xflat = xpad.reshape(N, C, Hp * Wp)
    xflat = jnp.pad(xflat, ((0, 0), (0, 0), (0, LX - Hp * Wp)))   # (N, C, LX)

    # Constant validity mask for the stage-1 plane (rows 1..H, cols 1..W valid).
    k = jnp.arange(LA)
    ii = k // Wp
    jj = k - ii * Wp
    mask = (((ii >= 1) & (ii <= H) & (jj >= 1) & (jj <= W))
            .astype(jnp.float32).reshape(1, LA))

    # Parameter setup (ModuleList selection by `num` + algebraic folding is JAX glue).
    #   conv bias + CAFM(k=1):  (v + b)  ->  (v+b)*cw + cb)*g + (v+b)  =  v*s + t
    #   with s = g*cw + 1,  t = b*s + g*cb ;  stage-2 additionally folds res_scale.
    w1t = jnp.transpose(params["w1"], (0, 1, 3, 2))               # HWIO -> HWOI
    w2t = jnp.transpose(params["w2"], (0, 1, 3, 2))
    g1 = params["cafm1_g"][num]
    g2 = params["cafm2_g"][num]
    s1v = g1 * params["cafm1_w"][num] + 1.0                       # (C,)
    t1v = params["b1"] * s1v + g1 * params["cafm1_b"][num]
    s2v = g2 * params["cafm2_w"][num] + 1.0
    t2v = params["b2"] * s2v + g2 * params["cafm2_b"][num]
    s1 = s1v.reshape(C, 1).astype(jnp.float32)
    t1 = t1v.reshape(C, 1).astype(jnp.float32)
    s2 = (res_scale * s2v).reshape(C, 1).astype(jnp.float32)
    t2 = (res_scale * t2v).reshape(C, 1).astype(jnp.float32)

    def rep_spec(shape):
        zeros = (0,) * len(shape)
        return pl.BlockSpec(shape, lambda n, _z=zeros: _z)

    kernel = functools.partial(_resblock_kernel, W=W)
    out_flat = pl.pallas_call(
        kernel,
        out_shape=jax.ShapeDtypeStruct((N, C, LO), x_nchw.dtype),
        grid_spec=pltpu.PrefetchScalarGridSpec(
            num_scalar_prefetch=0,
            grid=(N,),
            in_specs=[
                pl.BlockSpec((None, C, LX), lambda n: (n, 0, 0)),
                rep_spec((1, LA)),
                rep_spec((3, 3, C, C)), rep_spec((3, 3, C, C)),
                rep_spec((C, 1)), rep_spec((C, 1)),
                rep_spec((C, 1)), rep_spec((C, 1)),
            ],
            out_specs=pl.BlockSpec((None, C, LO), lambda n: (n, 0, 0)),
            scratch_shapes=[pltpu.VMEM((C, LA), jnp.float32)],
        ),
        compiler_params=pltpu.CompilerParams(
            dimension_semantics=("parallel",)),
    )(xflat, mask, w1t, w2t, s1, t1, s2, t2)

    # Glue: drop padded tail and the junk columns (cols >= W of each output row).
    out = out_flat[:, :, :H * Wp].reshape(N, C, H, Wp)[:, :, :, :W]
    return out


def resblock_reference(x_nchw, params, num, *, res_scale=1.0):
    """Pure-JAX reference (matches the PyTorch forward)."""
    x = jnp.transpose(x_nchw, (0, 2, 3, 1))                       # NHWC

    def conv(v, w, b):
        y = lax.conv_general_dilated(
            v, w, window_strides=(1, 1), padding="SAME",
            dimension_numbers=("NHWC", "HWIO", "NHWC"))
        return y + b

    def cafm(v, cw, cb, g):
        return (v * cw + cb) * g + v

    y = conv(x, params["w1"], params["b1"])
    y = cafm(y, params["cafm1_w"][num], params["cafm1_b"][num], params["cafm1_g"][num])
    y = jnp.maximum(y, 0.0)
    y = conv(y, params["w2"], params["b2"])
    y = cafm(y, params["cafm2_w"][num], params["cafm2_b"][num], params["cafm2_g"][num])
    out = y * res_scale + x
    return jnp.transpose(out, (0, 3, 1, 2))


if __name__ == "__main__":
    # Small shapes consistent with the module: ResBlock(default_conv, n_feats=8, kernel=3),
    # args.segnum = 3, args.cafm = args.use_cafm = True, res_scale = 1.
    N, C, H, W = 2, 8, 16, 16
    segnum, num = 3, 1
    res_scale = 1.0

    key = jax.random.PRNGKey(0)
    ks = jax.random.split(key, 11)
    # Deterministic synthetic parameters (module __init__ gives the shapes).
    # Note: the module inits CAFM gamma to 0; we use nonzero values so the CAFM
    # path is actually exercised.  CAFM depthwise 1x1 conv weight (C,1,1,1) is
    # stored as a per-channel vector (C,) -- equivalent.
    params = {
        "w1": 0.1 * jax.random.normal(ks[0], (3, 3, C, C), jnp.float32),   # HWIO
        "b1": 0.1 * jax.random.normal(ks[1], (C,), jnp.float32),
        "w2": 0.1 * jax.random.normal(ks[2], (3, 3, C, C), jnp.float32),
        "b2": 0.1 * jax.random.normal(ks[3], (C,), jnp.float32),
        "cafm1_w": 0.1 * jax.random.normal(ks[4], (segnum, C), jnp.float32),
        "cafm1_b": 0.1 * jax.random.normal(ks[5], (segnum, C), jnp.float32),
        "cafm1_g": 0.5 * jax.random.normal(ks[6], (segnum,), jnp.float32),
        "cafm2_w": 0.1 * jax.random.normal(ks[7], (segnum, C), jnp.float32),
        "cafm2_b": 0.1 * jax.random.normal(ks[8], (segnum, C), jnp.float32),
        "cafm2_g": 0.5 * jax.random.normal(ks[9], (segnum,), jnp.float32),
    }
    x = jax.random.normal(ks[10], (N, C, H, W), jnp.float32)

    out = resblock_pallas(x, params, num, res_scale=res_scale)
    out = jax.block_until_ready(out)

    ref = resblock_reference(x, params, num, res_scale=res_scale)
    assert out.shape == (N, C, H, W)
    assert jnp.allclose(out, ref, atol=2e-4, rtol=2e-4), (
        "max abs err = %g" % float(jnp.max(jnp.abs(out - ref))))
    print("KERNEL_OK")
</pallas_src>

<mosaic_0001>
module attributes {stable_mosaic.version = 11 : i64} {
  func.func @_resblock_kernel(%arg0: i32, %arg1: memref<1x8x640xf32, #tpu.memory_space<vmem>>, %arg2: memref<1x512xf32, #tpu.memory_space<vmem>>, %arg3: memref<3x3x8x8xf32, #tpu.memory_space<vmem>>, %arg4: memref<3x3x8x8xf32, #tpu.memory_space<vmem>>, %arg5: memref<8x1xf32, #tpu.memory_space<vmem>>, %arg6: memref<8x1xf32, #tpu.memory_space<vmem>>, %arg7: memref<8x1xf32, #tpu.memory_space<vmem>>, %arg8: memref<8x1xf32, #tpu.memory_space<vmem>>, %arg9: memref<1x8x384xf32, #tpu.memory_space<vmem>>, %arg10: memref<8x512xf32, #tpu.memory_space<vmem>>) attributes {dimension_semantics = [#tpu.dimension_semantics<parallel>], iteration_bounds = array<i64: 2>, scalar_prefetch = 0 : i64, scratch_operands = 1 : i64, tpu.core_type = #tpu.core_type<tc>, window_params = [{transform_indices = @transform_0, window_bounds = array<i64: 1, 8, 640>}, {pipeline_mode = #tpu.pipeline_mode<synchronous>, transform_indices = @transform_1, window_bounds = array<i64: 1, 512>}, {pipeline_mode = #tpu.pipeline_mode<synchronous>, transform_indices = @transform_2, window_bounds = array<i64: 3, 3, 8, 8>}, {pipeline_mode = #tpu.pipeline_mode<synchronous>, transform_indices = @transform_3, window_bounds = array<i64: 3, 3, 8, 8>}, {pipeline_mode = #tpu.pipeline_mode<synchronous>, transform_indices = @transform_4, window_bounds = array<i64: 8, 1>}, {pipeline_mode = #tpu.pipeline_mode<synchronous>, transform_indices = @transform_5, window_bounds = array<i64: 8, 1>}, {pipeline_mode = #tpu.pipeline_mode<synchronous>, transform_indices = @transform_6, window_bounds = array<i64: 8, 1>}, {pipeline_mode = #tpu.pipeline_mode<synchronous>, transform_indices = @transform_7, window_bounds = array<i64: 8, 1>}, {transform_indices = @transform_8, window_bounds = array<i64: 1, 8, 384>}]} {
    %c0 = arith.constant 0 : index
    %c0_0 = arith.constant 0 : index
    %0 = vector.load %arg2[%c0, %c0_0] : memref<1x512xf32, #tpu.memory_space<vmem>>, vector<1x512xf32>
    %c0_1 = arith.constant 0 : index
    %c0_2 = arith.constant 0 : index
    %1 = vector.load %arg5[%c0_1, %c0_2] : memref<8x1xf32, #tpu.memory_space<vmem>>, vector<8x1xf32>
    %c0_3 = arith.constant 0 : index
    %c0_4 = arith.constant 0 : index
    %2 = vector.load %arg6[%c0_3, %c0_4] : memref<8x1xf32, #tpu.memory_space<vmem>>, vector<8x1xf32>
    %c0_5 = arith.constant 0 : index
    %c0_6 = arith.constant 0 : index
    %3 = vector.load %arg7[%c0_5, %c0_6] : memref<8x1xf32, #tpu.memory_space<vmem>>, vector<8x1xf32>
    %c0_7 = arith.constant 0 : index
    %c0_8 = arith.constant 0 : index
    %4 = vector.load %arg8[%c0_7, %c0_8] : memref<8x1xf32, #tpu.memory_space<vmem>>, vector<8x1xf32>
    %cst = arith.constant 0.000000e+00 : f32
    %5 = vector.broadcast %cst : f32 to vector<8x512xf32>
    %c0_9 = arith.constant 0 : index
    %c0_10 = arith.constant 0 : index
    %c0_11 = arith.constant 0 : index
    %6 = vector.load %arg1[%c0_9, %c0_10, %c0_11] : memref<1x8x640xf32, #tpu.memory_space<vmem>>, vector<1x8x512xf32>
    %7 = vector.shape_cast %6 : vector<1x8x512xf32> to vector<8x512xf32>
    %c0_12 = arith.constant 0 : index
    %c0_13 = arith.constant 0 : index
    %c0_14 = arith.constant 0 : index
    %c0_15 = arith.constant 0 : index
    %8 = vector.load %arg3[%c0_12, %c0_13, %c0_14, %c0_15] : memref<3x3x8x8xf32, #tpu.memory_space<vmem>>, vector<1x1x8x8xf32>
    %9 = vector.shape_cast %8 : vector<1x1x8x8xf32> to vector<8x8xf32>
    %cst_16 = arith.constant dense<0.000000e+00> : vector<8x512xf32>
    %10 = tpu.matmul %9, %7, %cst_16 {dimension_numbers = #tpu.dot_dimension_numbers<[1], [0], [0], [1], [0, 0, 1, 1], [], []>} : vector<8x8xf32>, vector<8x512xf32>, vector<8x512xf32> -> vector<8x512xf32>
    %11 = arith.addf %5, %10 : vector<8x512xf32>
    %c0_17 = arith.constant 0 : index
    %c0_18 = arith.constant 0 : index
    %c1 = arith.constant 1 : index
    %12 = vector.load %arg1[%c0_17, %c0_18, %c1] : memref<1x8x640xf32, #tpu.memory_space<vmem>>, vector<1x8x512xf32>
    %13 = vector.shape_cast %12 : vector<1x8x512xf32> to vector<8x512xf32>
    %c0_19 = arith.constant 0 : index
    %c1_20 = arith.constant 1 : index
    %c0_21 = arith.constant 0 : index
    %c0_22 = arith.constant 0 : index
    %14 = vector.load %arg3[%c0_19, %c1_20, %c0_21, %c0_22] : memref<3x3x8x8xf32, #tpu.memory_space<vmem>>, vector<1x1x8x8xf32>
    %15 = vector.shape_cast %14 : vector<1x1x8x8xf32> to vector<8x8xf32>
    %cst_23 = arith.constant dense<0.000000e+00> : vector<8x512xf32>
    %16 = tpu.matmul %15, %13, %cst_23 {dimension_numbers = #tpu.dot_dimension_numbers<[1], [0], [0], [1], [0, 0, 1, 1], [], []>} : vector<8x8xf32>, vector<8x512xf32>, vector<8x512xf32> -> vector<8x512xf32>
    %17 = arith.addf %11, %16 : vector<8x512xf32>
    %c0_24 = arith.constant 0 : index
    %c0_25 = arith.constant 0 : index
    %c2 = arith.constant 2 : index
    %18 = vector.load %arg1[%c0_24, %c0_25, %c2] : memref<1x8x640xf32, #tpu.memory_space<vmem>>, vector<1x8x512xf32>
    %19 = vector.shape_cast %18 : vector<1x8x512xf32> to vector<8x512xf32>
    %c0_26 = arith.constant 0 : index
    %c2_27 = arith.constant 2 : index
    %c0_28 = arith.constant 0 : index
    %c0_29 = arith.constant 0 : index
    %20 = vector.load %arg3[%c0_26, %c2_27, %c0_28, %c0_29] : memref<3x3x8x8xf32, #tpu.memory_space<vmem>>, vector<1x1x8x8xf32>
    %21 = vector.shape_cast %20 : vector<1x1x8x8xf32> to vector<8x8xf32>
    %cst_30 = arith.constant dense<0.000000e+00> : vector<8x512xf32>
    %22 = tpu.matmul %21, %19, %cst_30 {dimension_numbers = #tpu.dot_dimension_numbers<[1], [0], [0], [1], [0, 0, 1, 1], [], []>} : vector<8x8xf32>, vector<8x512xf32>, vector<8x512xf32> -> vector<8x512xf32>
    %23 = arith.addf %17, %22 : vector<8x512xf32>
    %c0_31 = arith.constant 0 : index
    %c0_32 = arith.constant 0 : index
    %c20 = arith.constant 20 : index
    %24 = vector.load %arg1[%c0_31, %c0_32, %c20] : memref<1x8x640xf32, #tpu.memory_space<vmem>>, vector<1x8x512xf32>
    %25 = vector.shape_cast %24 : vector<1x8x512xf32> to vector<8x512xf32>
    %c1_33 = arith.constant 1 : index
    %c0_34 = arith.constant 0 : index
    %c0_35 = arith.constant 0 : index
    %c0_36 = arith.constant 0 : index
    %26 = vector.load %arg3[%c1_33, %c0_34, %c0_35, %c0_36] : memref<3x3x8x8xf32, #tpu.memory_space<vmem>>, vector<1x1x8x8xf32>
    %27 = vector.shape_cast %26 : vector<1x1x8x8xf32> to vector<8x8xf32>
    %cst_37 = arith.constant dense<0.000000e+00> : vector<8x512xf32>
    %28 = tpu.matmul %27, %25, %cst_37 {dimension_numbers = #tpu.dot_dimension_numbers<[1], [0], [0], [1], [0, 0, 1, 1], [], []>} : vector<8x8xf32>, vector<8x512xf32>, vector<8x512xf32> -> vector<8x512xf32>
    %29 = arith.addf %23, %28 : vector<8x512xf32>
    %c0_38 = arith.constant 0 : index
    %c0_39 = arith.constant 0 : index
    %c21 = arith.constant 21 : index
    %30 = vector.load %arg1[%c0_38, %c0_39, %c21] : memref<1x8x640xf32, #tpu.memory_space<vmem>>, vector<1x8x512xf32>
    %31 = vector.shape_cast %30 : vector<1x8x512xf32> to vector<8x512xf32>
    %c1_40 = arith.constant 1 : index
    %c1_41 = arith.constant 1 : index
    %c0_42 = arith.constant 0 : index
    %c0_43 = arith.constant 0 : index
    %32 = vector.load %arg3[%c1_40, %c1_41, %c0_42, %c0_43] : memref<3x3x8x8xf32, #tpu.memory_space<vmem>>, vector<1x1x8x8xf32>
    %33 = vector.shape_cast %32 : vector<1x1x8x8xf32> to vector<8x8xf32>
    %cst_44 = arith.constant dense<0.000000e+00> : vector<8x512xf32>
    %34 = tpu.matmul %33, %31, %cst_44 {dimension_numbers = #tpu.dot_dimension_numbers<[1], [0], [0], [1], [0, 0, 1, 1], [], []>} : vector<8x8xf32>, vector<8x512xf32>, vector<8x512xf32> -> vector<8x512xf32>
    %35 = arith.addf %29, %34 : vector<8x512xf32>
    %c0_45 = arith.constant 0 : index
    %c0_46 = arith.constant 0 : index
    %c22 = arith.constant 22 : index
    %36 = vector.load %arg1[%c0_45, %c0_46, %c22] : memref<1x8x640xf32, #tpu.memory_space<vmem>>, vector<1x8x512xf32>
    %37 = vector.shape_cast %36 : vector<1x8x512xf32> to vector<8x512xf32>
    %c1_47 = arith.constant 1 : index
    %c2_48 = arith.constant 2 : index
    %c0_49 = arith.constant 0 : index
    %c0_50 = arith.constant 0 : index
    %38 = vector.load %arg3[%c1_47, %c2_48, %c0_49, %c0_50] : memref<3x3x8x8xf32, #tpu.memory_space<vmem>>, vector<1x1x8x8xf32>
    %39 = vector.shape_cast %38 : vector<1x1x8x8xf32> to vector<8x8xf32>
    %cst_51 = arith.constant dense<0.000000e+00> : vector<8x512xf32>
    %40 = tpu.matmul %39, %37, %cst_51 {dimension_numbers = #tpu.dot_dimension_numbers<[1], [0], [0], [1], [0, 0, 1, 1], [], []>} : vector<8x8xf32>, vector<8x512xf32>, vector<8x512xf32> -> vector<8x512xf32>
    %41 = arith.addf %35, %40 : vector<8x512xf32>
    %c0_52 = arith.constant 0 : index
    %c0_53 = arith.constant 0 : index
    %c40 = arith.constant 40 : index
    %42 = vector.load %arg1[%c0_52, %c0_53, %c40] : memref<1x8x640xf32, #tpu.memory_space<vmem>>, vector<1x8x512xf32>
    %43 = vector.shape_cast %42 : vector<1x8x512xf32> to vector<8x512xf32>
    %c2_54 = arith.constant 2 : index
    %c0_55 = arith.constant 0 : index
    %c0_56 = arith.constant 0 : index
    %c0_57 = arith.constant 0 : index
    %44 = vector.load %arg3[%c2_54, %c0_55, %c0_56, %c0_57] : memref<3x3x8x8xf32, #tpu.memory_space<vmem>>, vector<1x1x8x8xf32>
    %45 = vector.shape_cast %44 : vector<1x1x8x8xf32> to vector<8x8xf32>
    %cst_58 = arith.constant dense<0.000000e+00> : vector<8x512xf32>
    %46 = tpu.matmul %45, %43, %cst_58 {dimension_numbers = #tpu.dot_dimension_numbers<[1], [0], [0], [1], [0, 0, 1, 1], [], []>} : vector<8x8xf32>, vector<8x512xf32>, vector<8x512xf32> -> vector<8x512xf32>
    %47 = arith.addf %41, %46 : vector<8x512xf32>
    %c0_59 = arith.constant 0 : index
    %c0_60 = arith.constant 0 : index
    %c41 = arith.constant 41 : index
    %48 = vector.load %arg1[%c0_59, %c0_60, %c41] : memref<1x8x640xf32, #tpu.memory_space<vmem>>, vector<1x8x512xf32>
    %49 = vector.shape_cast %48 : vector<1x8x512xf32> to vector<8x512xf32>
    %c2_61 = arith.constant 2 : index
    %c1_62 = arith.constant 1 : index
    %c0_63 = arith.constant 0 : index
    %c0_64 = arith.constant 0 : index
    %50 = vector.load %arg3[%c2_61, %c1_62, %c0_63, %c0_64] : memref<3x3x8x8xf32, #tpu.memory_space<vmem>>, vector<1x1x8x8xf32>
    %51 = vector.shape_cast %50 : vector<1x1x8x8xf32> to vector<8x8xf32>
    %cst_65 = arith.constant dense<0.000000e+00> : vector<8x512xf32>
    %52 = tpu.matmul %51, %49, %cst_65 {dimension_numbers = #tpu.dot_dimension_numbers<[1], [0], [0], [1], [0, 0, 1, 1], [], []>} : vector<8x8xf32>, vector<8x512xf32>, vector<8x512xf32> -> vector<8x512xf32>
    %53 = arith.addf %47, %52 : vector<8x512xf32>
    %c0_66 = arith.constant 0 : index
    %c0_67 = arith.constant 0 : index
    %c42 = arith.constant 42 : index
    %54 = vector.load %arg1[%c0_66, %c0_67, %c42] : memref<1x8x640xf32, #tpu.memory_space<vmem>>, vector<1x8x512xf32>
    %55 = vector.shape_cast %54 : vector<1x8x512xf32> to vector<8x512xf32>
    %c2_68 = arith.constant 2 : index
    %c2_69 = arith.constant 2 : index
    %c0_70 = arith.constant 0 : index
    %c0_71 = arith.constant 0 : index
    %56 = vector.load %arg3[%c2_68, %c2_69, %c0_70, %c0_71] : memref<3x3x8x8xf32, #tpu.memory_space<vmem>>, vector<1x1x8x8xf32>
    %57 = vector.shape_cast %56 : vector<1x1x8x8xf32> to vector<8x8xf32>
    %cst_72 = arith.constant dense<0.000000e+00> : vector<8x512xf32>
    %58 = tpu.matmul %57, %55, %cst_72 {dimension_numbers = #tpu.dot_dimension_numbers<[1], [0], [0], [1], [0, 0, 1, 1], [], []>} : vector<8x8xf32>, vector<8x512xf32>, vector<8x512xf32> -> vector<8x512xf32>
    %59 = arith.addf %53, %58 : vector<8x512xf32>
    %60 = vector.broadcast %1 : vector<8x1xf32> to vector<8x512xf32>
    %61 = arith.mulf %59, %60 : vector<8x512xf32>
    %62 = vector.broadcast %2 : vector<8x1xf32> to vector<8x512xf32>
    %63 = arith.addf %61, %62 : vector<8x512xf32>
    %cst_73 = arith.constant 0.000000e+00 : f32
    %64 = vector.broadcast %cst_73 : f32 to vector<8x512xf32>
    %65 = arith.maximumf %63, %64 : vector<8x512xf32>
    %66 = vector.broadcast %0 : vector<1x512xf32> to vector<8x512xf32>
    %67 = arith.mulf %65, %66 : vector<8x512xf32>
    %c0_74 = arith.constant 0 : index
    %c0_75 = arith.constant 0 : index
    %68 = vector.load %arg10[%c0_74, %c0_75] : memref<8x512xf32, #tpu.memory_space<vmem>>, vector<8x512xf32>
    tpu.vector_store %arg10[%c0_74, %c0_75], %67 {strides = array<i32>} : memref<8x512xf32, #tpu.memory_space<vmem>>, vector<8x512xf32>,
    %cst_76 = arith.constant 0.000000e+00 : f32
    %69 = vector.broadcast %cst_76 : f32 to vector<8x384xf32>
    %c0_77 = arith.constant 0 : index
    %c0_78 = arith.constant 0 : index
    %70 = vector.load %arg10[%c0_77, %c0_78] : memref<8x512xf32, #tpu.memory_space<vmem>>, vector<8x384xf32>
    %c0_79 = arith.constant 0 : index
    %c0_80 = arith.constant 0 : index
    %c0_81 = arith.constant 0 : index
    %c0_82 = arith.constant 0 : index
    %71 = vector.load %arg4[%c0_79, %c0_80, %c0_81, %c0_82] : memref<3x3x8x8xf32, #tpu.memory_space<vmem>>, vector<1x1x8x8xf32>
    %72 = vector.shape_cast %71 : vector<1x1x8x8xf32> to vector<8x8xf32>
    %cst_83 = arith.constant dense<0.000000e+00> : vector<8x384xf32>
    %73 = tpu.matmul %72, %70, %cst_83 {dimension_numbers = #tpu.dot_dimension_numbers<[1], [0], [0], [1], [0, 0, 1, 1], [], []>} : vector<8x8xf32>, vector<8x384xf32>, vector<8x384xf32> -> vector<8x384xf32>
    %74 = arith.addf %69, %73 : vector<8x384xf32>
    %c0_84 = arith.constant 0 : index
    %c1_85 = arith.constant 1 : index
    %75 = vector.load %arg10[%c0_84, %c1_85] : memref<8x512xf32, #tpu.memory_space<vmem>>, vector<8x384xf32>
    %c0_86 = arith.constant 0 : index
    %c1_87 = arith.constant 1 : index
    %c0_88 = arith.constant 0 : index
    %c0_89 = arith.constant 0 : index
    %76 = vector.load %arg4[%c0_86, %c1_87, %c0_88, %c0_89] : memref<3x3x8x8xf32, #tpu.memory_space<vmem>>, vector<1x1x8x8xf32>
    %77 = vector.shape_cast %76 : vector<1x1x8x8xf32> to vector<8x8xf32>
    %cst_90 = arith.constant dense<0.000000e+00> : vector<8x384xf32>
    %78 = tpu.matmul %77, %75, %cst_90 {dimension_numbers = #tpu.dot_dimension_numbers<[1], [0], [0], [1], [0, 0, 1, 1], [], []>} : vector<8x8xf32>, vector<8x384xf32>, vector<8x384xf32> -> vector<8x384xf32>
    %79 = arith.addf %74, %78 : vector<8x384xf32>
    %c0_91 = arith.constant 0 : index
    %c2_92 = arith.constant 2 : index
    %80 = vector.load %arg10[%c0_91, %c2_92] : memref<8x512xf32, #tpu.memory_space<vmem>>, vector<8x384xf32>
    %c0_93 = arith.constant 0 : index
    %c2_94 = arith.constant 2 : index
    %c0_95 = arith.constant 0 : index
    %c0_96 = arith.constant 0 : index
    %81 = vector.load %arg4[%c0_93, %c2_94, %c0_95, %c0_96] : memref<3x3x8x8xf32, #tpu.memory_space<vmem>>, vector<1x1x8x8xf32>
    %82 = vector.shape_cast %81 : vector<1x1x8x8xf32> to vector<8x8xf32>
    %cst_97 = arith.constant dense<0.000000e+00> : vector<8x384xf32>
    %83 = tpu.matmul %82, %80, %cst_97 {dimension_numbers = #tpu.dot_dimension_numbers<[1], [0], [0], [1], [0, 0, 1, 1], [], []>} : vector<8x8xf32>, vector<8x384xf32>, vector<8x384xf32> -> vector<8x384xf32>
    %84 = arith.addf %79, %83 : vector<8x384xf32>
    %c0_98 = arith.constant 0 : index
    %c20_99 = arith.constant 20 : index
    %85 = vector.load %arg10[%c0_98, %c20_99] : memref<8x512xf32, #tpu.memory_space<vmem>>, vector<8x384xf32>
    %c1_100 = arith.constant 1 : index
    %c0_101 = arith.constant 0 : index
    %c0_102 = arith.constant 0 : index
    %c0_103 = arith.constant 0 : index
    %86 = vector.load %arg4[%c1_100, %c0_101, %c0_102, %c0_103] : memref<3x3x8x8xf32, #tpu.memory_space<vmem>>, vector<1x1x8x8xf32>
    %87 = vector.shape_cast %86 : vector<1x1x8x8xf32> to vector<8x8xf32>
    %cst_104 = arith.constant dense<0.000000e+00> : vector<8x384xf32>
    %88 = tpu.matmul %87, %85, %cst_104 {dimension_numbers = #tpu.dot_dimension_numbers<[1], [0], [0], [1], [0, 0, 1, 1], [], []>} : vector<8x8xf32>, vector<8x384xf32>, vector<8x384xf32> -> vector<8x384xf32>
    %89 = arith.addf %84, %88 : vector<8x384xf32>
    %c0_105 = arith.constant 0 : index
    %c21_106 = arith.constant 21 : index
    %90 = vector.load %arg10[%c0_105, %c21_106] : memref<8x512xf32, #tpu.memory_space<vmem>>, vector<8x384xf32>
    %c1_107 = arith.constant 1 : index
    %c1_108 = arith.constant 1 : index
    %c0_109 = arith.constant 0 : index
    %c0_110 = arith.constant 0 : index
    %91 = vector.load %arg4[%c1_107, %c1_108, %c0_109, %c0_110] : memref<3x3x8x8xf32, #tpu.memory_space<vmem>>, vector<1x1x8x8xf32>
    %92 = vector.shape_cast %91 : vector<1x1x8x8xf32> to vector<8x8xf32>
    %cst_111 = arith.constant dense<0.000000e+00> : vector<8x384xf32>
    %93 = tpu.matmul %92, %90, %cst_111 {dimension_numbers = #tpu.dot_dimension_numbers<[1], [0], [0], [1], [0, 0, 1, 1], [], []>} : vector<8x8xf32>, vector<8x384xf32>, vector<8x384xf32> -> vector<8x384xf32>
    %94 = arith.addf %89, %93 : vector<8x384xf32>
    %c0_112 = arith.constant 0 : index
    %c22_113 = arith.constant 22 : index
    %95 = vector.load %arg10[%c0_112, %c22_113] : memref<8x512xf32, #tpu.memory_space<vmem>>, vector<8x384xf32>
    %c1_114 = arith.constant 1 : index
    %c2_115 = arith.constant 2 : index
    %c0_116 = arith.constant 0 : index
    %c0_117 = arith.constant 0 : index
    %96 = vector.load %arg4[%c1_114, %c2_115, %c0_116, %c0_117] : memref<3x3x8x8xf32, #tpu.memory_space<vmem>>, vector<1x1x8x8xf32>
    %97 = vector.shape_cast %96 : vector<1x1x8x8xf32> to vector<8x8xf32>
    %cst_118 = arith.constant dense<0.000000e+00> : vector<8x384xf32>
    %98 = tpu.matmul %97, %95, %cst_118 {dimension_numbers = #tpu.dot_dimension_numbers<[1], [0], [0], [1], [0, 0, 1, 1], [], []>} : vector<8x8xf32>, vector<8x384xf32>, vector<8x384xf32> -> vector<8x384xf32>
    %99 = arith.addf %94, %98 : vector<8x384xf32>
    %c0_119 = arith.constant 0 : index
    %c40_120 = arith.constant 40 : index
    %100 = vector.load %arg10[%c0_119, %c40_120] : memref<8x512xf32, #tpu.memory_space<vmem>>, vector<8x384xf32>
    %c2_121 = arith.constant 2 : index
    %c0_122 = arith.constant 0 : index
    %c0_123 = arith.constant 0 : index
    %c0_124 = arith.constant 0 : index
    %101 = vector.load %arg4[%c2_121, %c0_122, %c0_123, %c0_124] : memref<3x3x8x8xf32, #tpu.memory_space<vmem>>, vector<1x1x8x8xf32>
    %102 = vector.shape_cast %101 : vector<1x1x8x8xf32> to vector<8x8xf32>
    %cst_125 = arith.constant dense<0.000000e+00> : vector<8x384xf32>
    %103 = tpu.matmul %102, %100, %cst_125 {dimension_numbers = #tpu.dot_dimension_numbers<[1], [0], [0], [1], [0, 0, 1, 1], [], []>} : vector<8x8xf32>, vector<8x384xf32>, vector<8x384xf32> -> vector<8x384xf32>
    %104 = arith.addf %99, %103 : vector<8x384xf32>
    %c0_126 = arith.constant 0 : index
    %c41_127 = arith.constant 41 : index
    %105 = vector.load %arg10[%c0_126, %c41_127] : memref<8x512xf32, #tpu.memory_space<vmem>>, vector<8x384xf32>
    %c2_128 = arith.constant 2 : index
    %c1_129 = arith.constant 1 : index
    %c0_130 = arith.constant 0 : index
    %c0_131 = arith.constant 0 : index
    %106 = vector.load %arg4[%c2_128, %c1_129, %c0_130, %c0_131] : memref<3x3x8x8xf32, #tpu.memory_space<vmem>>, vector<1x1x8x8xf32>
    %107 = vector.shape_cast %106 : vector<1x1x8x8xf32> to vector<8x8xf32>
    %cst_132 = arith.constant dense<0.000000e+00> : vector<8x384xf32>
    %108 = tpu.matmul %107, %105, %cst_132 {dimension_numbers = #tpu.dot_dimension_numbers<[1], [0], [0], [1], [0, 0, 1, 1], [], []>} : vector<8x8xf32>, vector<8x384xf32>, vector<8x384xf32> -> vector<8x384xf32>
    %109 = arith.addf %104, %108 : vector<8x384xf32>
    %c0_133 = arith.constant 0 : index
    %c42_134 = arith.constant 42 : index
    %110 = vector.load %arg10[%c0_133, %c42_134] : memref<8x512xf32, #tpu.memory_space<vmem>>, vector<8x384xf32>
    %c2_135 = arith.constant 2 : index
    %c2_136 = arith.constant 2 : index
    %c0_137 = arith.constant 0 : index
    %c0_138 = arith.constant 0 : index
    %111 = vector.load %arg4[%c2_135, %c2_136, %c0_137, %c0_138] : memref<3x3x8x8xf32, #tpu.memory_space<vmem>>, vector<1x1x8x8xf32>
    %112 = vector.shape_cast %111 : vector<1x1x8x8xf32> to vector<8x8xf32>
    %cst_139 = arith.constant dense<0.000000e+00> : vector<8x384xf32>
    %113 = tpu.matmul %112, %110, %cst_139 {dimension_numbers = #tpu.dot_dimension_numbers<[1], [0], [0], [1], [0, 0, 1, 1], [], []>} : vector<8x8xf32>, vector<8x384xf32>, vector<8x384xf32> -> vector<8x384xf32>
    %114 = arith.addf %109, %113 : vector<8x384xf32>
    %c0_140 = arith.constant 0 : index
    %c0_141 = arith.constant 0 : index
    %c42_142 = arith.constant 42 : index
    %115 = vector.load %arg1[%c0_140, %c0_141, %c42_142] : memref<1x8x640xf32, #tpu.memory_space<vmem>>, vector<1x8x384xf32>
    %116 = vector.shape_cast %115 : vector<1x8x384xf32> to vector<8x384xf32>
    %117 = vector.broadcast %3 : vector<8x1xf32> to vector<8x384xf32>
    %118 = arith.mulf %114, %117 : vector<8x384xf32>
    %119 = vector.broadcast %4 : vector<8x1xf32> to vector<8x384xf32>
    %120 = arith.addf %118, %119 : vector<8x384xf32>
    %121 = arith.addf %120, %116 : vector<8x384xf32>
    %c0_143 = arith.constant 0 : index
    %c0_144 = arith.constant 0 : index
    %c0_145 = arith.constant 0 : index
    %122 = vector.load %arg9[%c0_143, %c0_144, %c0_145] : memref<1x8x384xf32, #tpu.memory_space<vmem>>, vector<1x8x384xf32>
    %123 = vector.shape_cast %122 : vector<1x8x384xf32> to vector<8x384xf32>
    %124 = vector.shape_cast %121 : vector<8x384xf32> to vector<1x8x384xf32>
    tpu.vector_store %arg9[%c0_143, %c0_144, %c0_145], %124 {strides = array<i32>} : memref<1x8x384xf32, #tpu.memory_space<vmem>>, vector<1x8x384xf32>,
    return
  }
  func.func @transform_0(%arg0: i32) -> (i32, i32, i32) {
    %c0_i32 = arith.constant 0 : i32
    %c0_i32_0 = arith.constant 0 : i32
    %c0_i32_1 = arith.constant 0 : i32
    return %arg0, %c0_i32, %c0_i32_0 : i32, i32, i32
  }
  func.func @transform_1(%arg0: i32) -> (i32, i32) {
    %c0_i32 = arith.constant 0 : i32
    %c0_i32_0 = arith.constant 0 : i32
    %c0_i32_1 = arith.constant 0 : i32
    return %c0_i32, %c0_i32_0 : i32, i32
  }
  func.func @transform_2(%arg0: i32) -> (i32, i32, i32, i32) {
    %c0_i32 = arith.constant 0 : i32
    %c0_i32_0 = arith.constant 0 : i32
    %c0_i32_1 = arith.constant 0 : i32
    %c0_i32_2 = arith.constant 0 : i32
    %c0_i32_3 = arith.constant 0 : i32
    return %c0_i32, %c0_i32_0, %c0_i32_1, %c0_i32_2 : i32, i32, i32, i32
  }
  func.func @transform_3(%arg0: i32) -> (i32, i32, i32, i32) {
    %c0_i32 = arith.constant 0 : i32
    %c0_i32_0 = arith.constant 0 : i32
    %c0_i32_1 = arith.constant 0 : i32
    %c0_i32_2 = arith.constant 0 : i32
    %c0_i32_3 = arith.constant 0 : i32
    return %c0_i32, %c0_i32_0, %c0_i32_1, %c0_i32_2 : i32, i32, i32, i32
  }
  func.func @transform_4(%arg0: i32) -> (i32, i32) {
    %c0_i32 = arith.constant 0 : i32
    %c0_i32_0 = arith.constant 0 : i32
    %c0_i32_1 = arith.constant 0 : i32
    return %c0_i32, %c0_i32_0 : i32, i32
  }
  func.func @transform_5(%arg0: i32) -> (i32, i32) {
    %c0_i32 = arith.constant 0 : i32
    %c0_i32_0 = arith.constant 0 : i32
    %c0_i32_1 = arith.constant 0 : i32
    return %c0_i32, %c0_i32_0 : i32, i32
  }
  func.func @transform_6(%arg0: i32) -> (i32, i32) {
    %c0_i32 = arith.constant 0 : i32
    %c0_i32_0 = arith.constant 0 : i32
    %c0_i32_1 = arith.constant 0 : i32
    return %c0_i32, %c0_i32_0 : i32, i32
  }
  func.func @transform_7(%arg0: i32) -> (i32, i32) {
    %c0_i32 = arith.constant 0 : i32
    %c0_i32_0 = arith.constant 0 : i32
    %c0_i32_1 = arith.constant 0 : i32
    return %c0_i32, %c0_i32_0 : i32, i32
  }
  func.func @transform_8(%arg0: i32) -> (i32, i32, i32) {
    %c0_i32 = arith.constant 0 : i32
    %c0_i32_0 = arith.constant 0 : i32
    %c0_i32_1 = arith.constant 0 : i32
    return %arg0, %c0_i32, %c0_i32_0 : i32, i32, i32
  }
}

</mosaic_0001>

<bundles_post_ra>
// kernel: tpu_custom_call.1
= control target key start
LH: loop header
LB: loop body
LE: loop exit
PB: predicated region body
PF: predicated region fallthrough
CT: control target
= control target key end

     0   :  { %s3147_s0 = inlined_call_operand.hbm [shape: f32[2,8,640], index: 0, kind: input, shape index: {}]   ;;  %s3148_s1 = inlined_call_operand.vmem [shape: f32[1,512], index: 1, kind: input, shape index: {}]   ;;  %s3149_s2 = inlined_call_operand.hbm [shape: f32[3,3,8,8], index: 2, kind: input, shape index: {}]   ;;  %s3150_s3 = inlined_call_operand.hbm [shape: f32[3,3,8,8], index: 3, kind: input, shape index: {}]   ;;  %s3151_s4 = inlined_call_operand.vmem [shape: f32[8,1], index: 4, kind: input, shape index: {}]   ;;  %s3152_s5 = inlined_call_operand.vmem [shape: f32[8,1], index: 5, kind: input, shape index: {}]   ;;  %s3153_s6 = inlined_call_operand.vmem [shape: f32[8,1], index: 6, kind: input, shape index: {}]   ;;  %s3154_s7 = inlined_call_operand.vmem [shape: f32[8,1], index: 7, kind: input, shape index: {}]   ;;  %s3155_s8 = inlined_call_operand.hbm [shape: f32[2,8,384], index: 8, kind: output, shape index: {}]  }
   0x1   :  { %3157 = sst [smem:[#allocation15_spill]] %s3149_s2 }
   0x2   :  { %3158 = sst [smem:[#allocation16_spill]] %s3150_s3 }
   0x3   :  { %13 = vsyncpa [#allocation4], 0 }
   0x4   :  { %15 = vsyncpa [#allocation4 + $0x1], 0 }
   0x5   :  { %16 = vsyncpa [#allocation7], 0 }
   0x6   :  { %17 = vsyncpa [#allocation5], 0 }
   0x7   :  { %19 = vsyncpa [#allocation5 + $0x1], 0  ;;  %s2779_s27 = smov 0   ;;  %s2781_s28 = smov 0  }
   0x8   :  { %s2783_s29 = smov 0   ;;  %s2785_s30 = smov 0  }
   0x9 LB: > { %3159 = sst [smem:[#allocation13_spill]] %s2715_s29  ;;  %s2803_s12 = sadd.s32 4294967295, %s2719_s30   ;;  %s2719_s30 = sphi %s2785_s30, %s3173_s30   ;;  %s2715_s29 = sphi %s2783_s29, %s3170_s29   ;;  %s2711_s28 = sphi %s2781_s28, %s3172_s28   ;;  %s2707_s27 = sphi %s2779_s27, %s3171_s27  }
   0xa   : > { %s3160_s2 = sld [smem:[#allocation15_spill]]  ;;  %p2239_p0 = scmp.ge.s32.totalorder %s2719_s30, 1 }
   0xb   : > { %p46_p1 = scmp.eq.s32.totalorder %s2803_s12, 0  ;;  %p229_p2 = scmp.lt.s32.totalorder %s2719_s30, 3 }
   0xc   : > { %s2721_s14 = smov [#allocation6]   ;;  %s3162_s3 = sld [smem:[#allocation16_spill]] }
   0xd   : > { %p2808_p3 = pnand %p2239_p0, %p229_p2  ;;  %s245_s15 = sshll.u32 %s2721_s14, 4  ;;  %s246_s15 = int_to_ptr.vmem [resolvable:$true] %s245_s15 }
   0xe   : > { %s2722_s19 = smov [#allocation8]   ;;  %s2723_s21 = smov 128  }
   0xf   : > { %p2330_p4 = pneg %p2808_p3  ;;  %s259_s20 = sshll.u32 %s2722_s19, 4  ;;  %s260_s20 = int_to_ptr.vmem [resolvable:$true] %s259_s20 }
  0x10   : > { %s243_s11 = sshll.u32 %s3160_s2, 4  ;;  %s2724_s22 = smov 8   ;;  %s244_s11 = int_to_ptr.hbm [resolvable:$true] %s243_s11 }
  0x11   : > { %p2331_p6 = pnand %p2330_p4, %p46_p1  ;;  %s2238_s23 = sadd.s32 4294967294, %s2719_s30  }
  0x12   : > { %s257_s18 = sshll.u32 %s3162_s3, 4  ;;  %s2822_s24 = sadd.s32 1, %s2719_s30   ;;  %s258_s18 = int_to_ptr.hbm [resolvable:$true] %s257_s18 }
  0x13   : > { %2333 = dma.hbm_to_vmem [thread:$0]  (!%p2331_p6), %s244_s11, 1152, %s246_s15, [#allocation7], %s2723_s21, %s2723_s21, %s2724_s22  }
  0x14   : > { %2336 = dma.hbm_to_vmem [thread:$0]  (!%p2331_p6), %s258_s18, 1152, %s260_s20, [#allocation7], %s2723_s21, %s2723_s21, %s2724_s22  }
  0x15   : > { %s29_s25 = ssub.s32 %s2719_s30, %s2822_s24  ;;  %s32_s26 = sadd.s32 1, %s2715_s29 }
  0x16   : > { %p30_p7 = scmp.eq.s32.totalorder %s29_s25, 0  ;;  %p39_p8 = scmp.ne.s32.totalorder %s2715_s29, %s2711_s28 }
  0x17   : > { %p40_p9 = scmp.eq.s32.totalorder %s2719_s30, 0  ;;  %p45_p10 = scmp.ne.s32.totalorder %s2711_s28, %s2707_s27 }
  0x18   : > { %s2833_s9 = scalar_select %p30_p7, %s2715_s29, %s32_s26  }
  0x19   : > { %p41_p11 = por %p40_p9, %p39_p8  ;;  %p2837_p12 = por %p46_p1, %p45_p10 }
  0x1a   : > { %3163 = sst [smem:[#allocation14_spill]] %s2833_s9  ;;  %p216_p13 = scmp.eq.s32.totalorder %s2803_s12, 1 }
  0x1b   : > { %p222_p0 = scmp.eq.s32.totalorder %s2238_s23, 1  ;;  %p2347_p2 = scmp.lt.s32.totalorder %s2719_s30, 2 }
  0x1c   : > { %s285_s11 = sand.u32 1, %s2715_s29   ;;  %p2844_p4 = por %p216_p13, %p39_p8 }
  0x1d   : > { %p2848_p6 = por %p222_p0, %p45_p10  ;;  %s2313_s16 = smul.u32 40, %s285_s11 }
  0x1e   : > { %s2314_s17 = smul.u32 40, %s2719_s30  ;;  %p2853_p7 = pnand %p2347_p2, %p41_p11 }
  0x1f   : > { %s289_s22 = scalar_lea.vmem [#allocation3], %s2313_s16  ;;  %s286_s26 = scalar_lea.sflag [#allocation4], %s285_s11 }
  0x20   : > { %s294_s21 = scalar_lea.hbm %s3147_s0, %s2314_s17  ;;  %s298_s23 = sshll.u32 %s289_s22, 4  ;;  %s299_s23 = int_to_ptr.vmem [resolvable:$true] %s298_s23 }
  0x21   : > { %s296_s25 = sshll.u32 %s294_s21, 4  ;;  %p2623_p9 = pneg %p2853_p7  ;;  %s297_s25 = int_to_ptr.hbm [resolvable:$true] %s296_s25 }
  0x22   : > { %s2619_s2 = sshra.s32 %s297_s25, 4  ;;  %s2626_s19 = scalar_lea.hbm %s3147_s0, 80  ;;  %s2620_s2 = int_to_ptr.hbm [resolvable:$true] %s2619_s2 }
  0x23   : > { %s2621_s3 = scalar_lea.hbm %s2620_s2, 40  ;;  %p2627_p13 = scmp.lt.s32.totalorder %s2620_s2, %s3147_s0 }
  0x24   : > { %p2622_p8 = scmp.ne.s32.totalorder %s2620_s2, %s2621_s3  ;;  %p2628_p0 = scmp.lt.s32.totalorder %s2626_s19, %s2621_s3 }
  0x26   : > { %p2624_p10 = pnand %p2623_p9, %p2622_p8  ;;  %p2629_p2 = por %p2628_p0, %p2627_p13 }
  0x28   : > { %p2625_p11 = pneg %p2624_p10 }
  0x2a   : > { %p2630_p5 = pnand %p2629_p2, %p2625_p11 }
  0x2c   : > { %2633 = shalt.err (!%p2630_p5)
}
  0x2d   : > { %2340 = dma.hbm_to_vmem [thread:$0]  (!%p2853_p7), %s297_s25, 640, %s299_s23, %s286_s26  }
  0x2e   : > { %307 = sbr.rel (%p2808_p3) target bundleno = 692 (0x2b4), region = 52  ;;  %s2873_s11 = sand.u32 (!%p2808_p3), 1, %s2711_s28  }
  0x2f   : > { %s2315_s29 = smul.u32 (!%p2808_p3), 40, %s2873_s11  ;;  %s310_s9 = scalar_lea.sflag (!%p2808_p3), [#allocation4], %s2873_s11 }
  0x31   : > { %s313_s16 = scalar_lea.vmem (!%p2808_p3), [#allocation3], %s2315_s29 }
  0x33   : > { %2694 = dma.done.wait (%p2837_p12), %s310_s9, 640  }
  0x34   : > { %2696 = vsyncadd (%p2837_p12), %s310_s9, 4294966656 }
  0x35   : > { %2698 = dma.done.wait (%p46_p1), [#allocation7], 2304  }
  0x36   : > { %2700 = vsyncadd (%p46_p1), [#allocation7], 4294964992  ;;  %v2885_v0 = vld [vmem:[%s313_s16 + $0x10] sm:$0xff]  ;;  %v2887_v1 = vld [vmem:[%s313_s16 + $0x18] sm:$0xff]  ;;  %s2725_s2 = smov 127   ;;  %s2726_s3 = smov 126  }
  0x37   : > { %v2889_v2 = vld [vmem:[%s313_s16 + $0x8] sm:$0xff]  ;;  %v2396_v3 = vpack.i.bf16 %v2887_v1, %v2885_v0  ;;  %v2895_v4 = vld [vmem:[%s313_s16] sm:$0xff]  ;;  %s2727_s13 = smov 108   ;;  %s2728_s10 = smov 107   ;;  %vm389_vm0 = vcmask 1039360   ;;  %v373_v15 = vld [vmem:[#allocation6 + $0x8] sm:$0xff] }
  0x38   : > { %381 = vrot.lane.b32.xlu1 %v2889_v2, %s2725_s2  ;;  %v371_v5 = vld [vmem:[%s313_s16 + $0x20] sm:$0xff]  ;;  %s2729_s18 = smov 106   ;;  %s2730_s21 = smov 88   ;;  %v2466_v7 = vpack.i.bf16 %v2889_v2, %v2895_v4  ;;  %vm398_vm1 = vcmask 64512   ;;  %vm577_vm2 = vcmask 1031168   ;;  %v366_v32 = vld [vmem:[#allocation6] sm:$0xff] }
  0x39   : > { %v2401_v6 = vpack.i.bf16 %v2895_v4, %v371_v5  ;;  %2397 = vrot.lane.b32.xlu0 %v2396_v3, %s2725_s2  ;;  %s2731_s22 = smov 87   ;;  %s2732_s23 = smov 86   ;;  %vm685_vm3 = vcmask 883712   ;;  %vm793_vm4 = vcmask 875520   ;;  %v566_v42 = vld [vmem:[#allocation6 + $0x10] sm:$0xff]  ;;  %vm901_vm5 = vcmask 867328  }
  0x3a   : > { %v674_v54 = vld [vmem:[#allocation6 + $0x18] sm:$0xff]  ;;  %vm1009_vm6 = vcmask 719872   ;;  %vm1117_vm7 = vcmask 711680   ;;  %vm1225_vm8 = vcmask 703488   ;;  %s2133_s26 = scalar_lea.sflag [#allocation5], %s2873_s11  ;;  %s2669_s9 = scalar_lea.hbm %s3155_s8, 48 }
  0x3b   : > { %2412 = vrot.lane.b32.xlu2 %v2401_v6, %s2726_s3 }
  0x40   : > { %2407 = vrot.lane.b32.xlu1 %v2396_v3, %s2726_s3 }
  0x41   : > { %2402 = vrot.lane.b32.xlu0 %v2401_v6, %s2725_s2 }
  0x43   : > { %2417 = vrot.lane.b32.xlu2 %v2396_v3, %s2727_s13 }
  0x48   : > { %569 = vrot.lane.b32.xlu1 %v2889_v2, %s2726_s3 }
  0x49   : > { %2422 = vrot.lane.b32.xlu0 %v2401_v6, %s2727_s13 }
  0x4b   : > { %2427 = vrot.lane.b32.xlu2 %v2396_v3, %s2728_s10 }
  0x50   : > { %677 = vrot.lane.b32.xlu1 %v2889_v2, %s2727_s13 }
  0x51   : > { %2432 = vrot.lane.b32.xlu0 %v2401_v6, %s2728_s10 }
  0x53   : > { %2437 = vrot.lane.b32.xlu2 %v2396_v3, %s2729_s18 }
  0x58   : > { %785 = vrot.lane.b32.xlu1 %v2889_v2, %s2728_s10 }
  0x59   : > { %2442 = vrot.lane.b32.xlu0 %v2401_v6, %s2729_s18 }
  0x5b   : > { %2447 = vrot.lane.b32.xlu2 %v2396_v3, %s2730_s21 }
  0x60   : > { %893 = vrot.lane.b32.xlu1 %v2889_v2, %s2729_s18 }
  0x61   : > { %2452 = vrot.lane.b32.xlu0 %v2401_v6, %s2730_s21  ;;  %v782_v6 = vld [vmem:[#allocation6 + $0x20] sm:$0xff] }
  0x63   : > { %2457 = vrot.lane.b32.xlu2 %v2396_v3, %s2731_s22 }
  0x68   : > { %1001 = vrot.lane.b32.xlu1 %v2889_v2, %s2730_s21 }
  0x69   : > { %1115 = vrot.lane.b32.xlu0 %v371_v5, %s2731_s22 }
  0x6b   : > { %2462 = vrot.lane.b32.xlu2 %v2396_v3, %s2732_s23 }
  0x70   : > { %2467 = vrot.lane.b32.xlu1 %v2466_v7, %s2731_s22 }
  0x71   : > { %1223 = vrot.lane.b32.xlu0 %v371_v5, %s2732_s23 }
  0x73   : > { %2472 = vrot.lane.b32.xlu2 %v2466_v7, %s2732_s23 }
  0x95   : > { %v2413_v8 = vpop.permute.xlu2 %2412 }
  0x96   : > { %v2414_v26 = vunpack.i.l.bf16 %v2413_v8  ;;  %v2415_v29 = vunpack.i.h.bf16 %v2413_v8 }
  0x9d   : > { %v2928_v9 = vpop.permute.xlu2 %2417 }
  0x9e   : > { %v2420_v27 = vunpack.i.h.bf16 %v2928_v9  ;;  %v2419_v28 = vunpack.i.l.bf16 %v2928_v9 }
  0xa0   : > { %v688_v35 = vsel %vm685_vm3, %v2419_v28, %v2420_v27 }
  0xa5   : > { %v2930_v11 = vpop.permute.xlu2 %2427 }
  0xa6   : > { %v2430_v38 = vunpack.i.h.bf16 %v2930_v11  ;;  %v2429_v39 = vunpack.i.l.bf16 %v2930_v11 }
  0xa8   : > { %v796_v46 = vsel %vm793_vm4, %v2429_v39, %v2430_v38 }
  0xaa   : > { %v382_v10 = vpop.permute.xlu1 %381 }
  0xab   : > { %v2398_v12 = vpop.permute.xlu0 %2397 }
  0xac   : > { %v2400_v13 = vunpack.i.h.bf16 %v2398_v12  ;;  %v2399_v14 = vunpack.i.l.bf16 %v2398_v12 }
  0xad   : > { %v2939_v25 = vpop.permute.xlu2 %2437 }
  0xae   : > { %v391_v16 = vsel %vm389_vm0, %v382_v10, %v2399_v14  ;;  %v392_v17 = vsel %vm389_vm0, %v2399_v14, %v2400_v13  ;;  %v2440_v50 = vunpack.i.h.bf16 %v2939_v25  ;;  %v2439_v51 = vunpack.i.l.bf16 %v2939_v25  ;;  %v358_v25 = vld [vmem:[%s3151_s4] sm:$0xff] }
  0xaf   : > { %437 = vmatpush.msra.mxu1 %v391_v16  ;;  %457 = vmatpush.msra.mxu2 %v392_v17 }
  0xb0   : > { %2248 = vmatmul.msk.f32.vlgmr.msra.gmra.mxu1 %vm398_vm1, %v373_v15  ;;  %2249 = vmatmul.msk.f32.vlgmr.msra.gmra.mxu2 %vm398_vm1, %v373_v15  ;;  %v904_v57 = vsel %vm901_vm5, %v2439_v51, %v2440_v50 }
  0xb1   : > { %520 = vmatpush.msrb.mxu1 %v2889_v2  ;;  %540 = vmatpush.msrb.mxu2 %v2885_v0 }
  0xb2   : > { %v2408_v18 = vpop.permute.xlu1 %2407 }
  0xb3   : > { %v2410_v19 = vunpack.i.h.bf16 %v2408_v18  ;;  %v2409_v20 = vunpack.i.l.bf16 %v2408_v18  ;;  %v2403_v21 = vpop.permute.xlu0 %2402  ;;  %v890_v18 = vld [vmem:[#allocation6 + $0x28] sm:$0xff] }
  0xb4   : > { %v2405_v22 = vunpack.i.h.bf16 %v2403_v21  ;;  %v2404_v23 = vunpack.i.l.bf16 %v2403_v21 }
  0xb5   : > { %v580_v24 = vsel %vm577_vm2, %v2409_v20, %v2410_v19  ;;  %v581_v34 = vsel %vm577_vm2, %v2410_v19, %v2414_v26  ;;  %v2957_v44 = vpop.permute.xlu2 %2447  ;;  %v359_v26 = vld [vmem:[%s3152_s5] sm:$0xff] }
  0xb6   : > { %644 = vmatpush.msra.mxu2 %v580_v24  ;;  %v390_v30 = vsel %vm389_vm0, %v2405_v22, %v382_v10  ;;  %v393_v31 = vsel %vm389_vm0, %v2400_v13, %v2404_v23  ;;  %v2450_v62 = vunpack.i.h.bf16 %v2957_v44  ;;  %v2449_v63 = vunpack.i.l.bf16 %v2957_v44  ;;  %v1106_v44 = vld [vmem:[#allocation6 + $0x38] sm:$0xff] }
  0xb7   : > { %417 = vmatpush.msra.mxu0 %v390_v30  ;;  %477 = vmatpush.msra.mxu3 %v393_v31  ;;  %v2733_v31 = vmov 0  }
  0xb8   : > { %2247 = vmatmul.msk.f32.vlgmr.msra.gmra.mxu0 %vm398_vm1, %v373_v15  ;;  %2250 = vmatmul.msk.f32.vlgmr.msra.gmra.mxu3 %vm398_vm1, %v373_v15  ;;  %v1012_v9 = vsel %vm1009_vm6, %v2449_v63, %v2450_v62 }
  0xb9   : > { %2252 = vmatmul.msk.f32.vlgmr.msrb.gmra.mxu1 %vm398_vm1, %v366_v32  ;;  %2253 = vmatmul.msk.f32.vlgmr.msrb.gmra.mxu2 %vm398_vm1, %v366_v32 }
  0xba   : > { %v570_v33 = vpop.permute.xlu1 %569  ;;  %500 = vmatpush.msrb.mxu0 %v2895_v4  ;;  %560 = vmatpush.msrb.mxu3 %v2887_v1 }
  0xbb   : > { %v578_v36 = vsel %vm577_vm2, %v2415_v29, %v570_v33  ;;  %v579_v37 = vsel %vm577_vm2, %v570_v33, %v2409_v20  ;;  %v2423_v40 = vpop.permute.xlu0 %2422  ;;  %752 = vmatpush.msrb.mxu2 %v688_v35  ;;  %2476 = vset.pattern.permute.xlu0 %v2733_v31 }
  0xbc   : > { %604 = vmatpush.msra.mxu0 %v578_v36  ;;  %624 = vmatpush.msra.mxu1 %v579_v37  ;;  %v2424_v41 = vunpack.i.l.bf16 %v2423_v40  ;;  %v2425_v43 = vunpack.i.h.bf16 %v2423_v40 }
  0xbd   : > { %664 = vmatpush.msra.mxu3 %v581_v34  ;;  %v2973_v58 = vpop.permute.xlu2 %2457  ;;  %2477 = vset.pattern.permute.xlu1 %v2733_v31 }
  0xbe   : > { %v689_v45 = vsel %vm685_vm3, %v2420_v27, %v2424_v41  ;;  %v2460_v14 = vunpack.i.h.bf16 %v2973_v58  ;;  %v2459_v15 = vunpack.i.l.bf16 %v2973_v58  ;;  %1323 = vperm.xlu0 %2476, %v358_v25   ;;  %1332 = vperm.xlu1 %2477, %v359_v26  }
  0xbf   : > { %2558 = vset.pattern.permute.xlu2 %v2733_v31 }
  0xc0   : > { %2251 = vmatmul.msk.f32.vlgmr.msrb.gmra.mxu0 %vm398_vm1, %v366_v32  ;;  %2254 = vmatmul.msk.f32.vlgmr.msrb.gmra.mxu3 %vm398_vm1, %v366_v32  ;;  %v1120_v21 = vsel %vm1117_vm7, %v2459_v15, %v2460_v14  ;;  %v998_v32 = vld [vmem:[#allocation6 + $0x30] sm:$0xff] }
  0xc1   : > { %2256 = vmatmul.msk.f32.vlgmr.msra.gmra.mxu1 %vm398_vm1, %v566_v42  ;;  %2257 = vmatmul.msk.f32.vlgmr.msra.gmra.mxu2 %vm398_vm1, %v566_v42 }
  0xc2   : > { %v678_v47 = vpop.permute.xlu1 %677  ;;  %772 = vmatpush.msrb.mxu3 %v689_v45  ;;  %860 = vmatpush.msra.mxu2 %v796_v46 }
  0xc3   : > { %v687_v48 = vsel %vm685_vm3, %v678_v47, %v2419_v28  ;;  %v686_v49 = vsel %vm685_vm3, %v2425_v43, %v678_v47  ;;  %v2433_v52 = vpop.permute.xlu0 %2432  ;;  %v1214_v47 = vld [vmem:[#allocation6 + $0x40] sm:$0xff] }
  0xc4   : > { %732 = vmatpush.msrb.mxu1 %v687_v48  ;;  %712 = vmatpush.msrb.mxu0 %v686_v49  ;;  %v2434_v53 = vunpack.i.l.bf16 %v2433_v52  ;;  %v2435_v55 = vunpack.i.h.bf16 %v2433_v52 }
  0xc5   : > { %v2463_v13 = vpop.permute.xlu2 %2462 }
  0xc6   : > { %v797_v56 = vsel %vm793_vm4, %v2430_v38, %v2434_v53  ;;  %v2465_v27 = vunpack.i.h.bf16 %v2463_v13  ;;  %v2464_v28 = vunpack.i.l.bf16 %v2463_v13 }
  0xc8   : > { %2255 = vmatmul.msk.f32.vlgmr.msra.gmra.mxu0 %vm398_vm1, %v566_v42  ;;  %2258 = vmatmul.msk.f32.vlgmr.msra.gmra.mxu3 %vm398_vm1, %v566_v42  ;;  %v1228_v35 = vsel %vm1225_vm8, %v2464_v28, %v2465_v27 }
  0xc9   : > { %2260 = vmatmul.msk.f32.vlgmr.msrb.gmra.mxu1 %vm398_vm1, %v674_v54  ;;  %2261 = vmatmul.msk.f32.vlgmr.msrb.gmra.mxu2 %vm398_vm1, %v674_v54 }
  0xca   : > { %v786_v59 = vpop.permute.xlu1 %785  ;;  %880 = vmatpush.msra.mxu3 %v797_v56  ;;  %968 = vmatpush.msrb.mxu2 %v904_v57 }
  0xcb   : > { %v795_v60 = vsel %vm793_vm4, %v786_v59, %v2429_v39  ;;  %v794_v61 = vsel %vm793_vm4, %v2435_v55, %v786_v59  ;;  %v2443_v3 = vpop.permute.xlu0 %2442 }
  0xcc   : > { %840 = vmatpush.msra.mxu1 %v795_v60  ;;  %820 = vmatpush.msra.mxu0 %v794_v61  ;;  %v2444_v5 = vunpack.i.l.bf16 %v2443_v3  ;;  %v2445_v7 = vunpack.i.h.bf16 %v2443_v3 }
  0xcd   : > { %v2473_v30 = vpop.permute.xlu2 %2472 }
  0xce   : > { %v905_v8 = vsel %vm901_vm5, %v2440_v50, %v2444_v5  ;;  %v2475_v34 = vunpack.i.h.bf16 %v2473_v30  ;;  %v2474_v39 = vunpack.i.l.bf16 %v2473_v30 }
  0xd0   : > { %2259 = vmatmul.msk.f32.vlgmr.msrb.gmra.mxu0 %vm398_vm1, %v674_v54  ;;  %2262 = vmatmul.msk.f32.vlgmr.msrb.gmra.mxu3 %vm398_vm1, %v674_v54  ;;  %v1227_v40 = vsel %vm1225_vm8, %v2475_v34, %v2464_v28  ;;  %v1226_v46 = vsel %vm1225_vm8, %v2474_v39, %v2475_v34 }
  0xd1   : > { %2264 = vmatmul.msk.f32.vlgmr.msra.gmra.mxu1 %vm398_vm1, %v782_v6  ;;  %2265 = vmatmul.msk.f32.vlgmr.msra.gmra.mxu2 %vm398_vm1, %v782_v6 }
  0xd2   : > { %v894_v10 = vpop.permute.xlu1 %893  ;;  %988 = vmatpush.msrb.mxu3 %v905_v8  ;;  %1076 = vmatpush.msra.mxu2 %v1012_v9 }
  0xd3   : > { %v903_v11 = vsel %vm901_vm5, %v894_v10, %v2439_v51  ;;  %v902_v12 = vsel %vm901_vm5, %v2445_v7, %v894_v10  ;;  %v2453_v16 = vpop.permute.xlu0 %2452 }
  0xd4   : > { %948 = vmatpush.msrb.mxu1 %v903_v11  ;;  %928 = vmatpush.msrb.mxu0 %v902_v12  ;;  %v2454_v17 = vunpack.i.l.bf16 %v2453_v16  ;;  %v2455_v19 = vunpack.i.h.bf16 %v2453_v16 }
  0xd6   : > { %v1013_v20 = vsel %vm1009_vm6, %v2450_v62, %v2454_v17 }
  0xd8   : > { %2263 = vmatmul.msk.f32.vlgmr.msra.gmra.mxu0 %vm398_vm1, %v782_v6  ;;  %2266 = vmatmul.msk.f32.vlgmr.msra.gmra.mxu3 %vm398_vm1, %v782_v6 }
  0xd9   : > { %2268 = vmatmul.msk.f32.vlgmr.msrb.gmra.mxu1 %vm398_vm1, %v890_v18  ;;  %2269 = vmatmul.msk.f32.vlgmr.msrb.gmra.mxu2 %vm398_vm1, %v890_v18 }
  0xda   : > { %v1002_v22 = vpop.permute.xlu1 %1001  ;;  %1096 = vmatpush.msra.mxu3 %v1013_v20  ;;  %1184 = vmatpush.msrb.mxu2 %v1120_v21 }
  0xdb   : > { %v1011_v23 = vsel %vm1009_vm6, %v1002_v22, %v2449_v63  ;;  %v1010_v24 = vsel %vm1009_vm6, %v2455_v19, %v1002_v22  ;;  %v1116_v29 = vpop.permute.xlu0 %1115 }
  0xdc   : > { %1056 = vmatpush.msra.mxu1 %v1011_v23  ;;  %1036 = vmatpush.msra.mxu0 %v1010_v24  ;;  %v1121_v33 = vsel %vm1117_vm7, %v2460_v14, %v1116_v29 }
  0xe0   : > { %2267 = vmatmul.msk.f32.vlgmr.msrb.gmra.mxu0 %vm398_vm1, %v890_v18  ;;  %2270 = vmatmul.msk.f32.vlgmr.msrb.gmra.mxu3 %vm398_vm1, %v890_v18 }
  0xe1   : > { %2272 = vmatmul.msk.f32.vlgmr.msra.gmra.mxu1 %vm398_vm1, %v998_v32  ;;  %2273 = vmatmul.msk.f32.vlgmr.msra.gmra.mxu2 %vm398_vm1, %v998_v32 }
  0xe2   : > { %v2468_v36 = vpop.permute.xlu1 %2467  ;;  %1204 = vmatpush.msrb.mxu3 %v1121_v33  ;;  %1292 = vmatpush.msra.mxu2 %v1228_v35 }
  0xe3   : > { %v2470_v37 = vunpack.i.h.bf16 %v2468_v36  ;;  %v2469_v38 = vunpack.i.l.bf16 %v2468_v36  ;;  %v1224_v42 = vpop.permute.xlu0 %1223 }
  0xe4   : > { %v1229_v45 = vsel %vm1225_vm8, %v2465_v27, %v1224_v42 }
  0xe5   : > { %v1119_v41 = vsel %vm1117_vm7, %v2470_v37, %v2459_v15  ;;  %v1118_v43 = vsel %vm1117_vm7, %v2469_v38, %v2470_v37 }
  0xe6   : > { %1164 = vmatpush.msrb.mxu1 %v1119_v41  ;;  %1144 = vmatpush.msrb.mxu0 %v1118_v43 }
  0xe8   : > { %1272 = vmatpush.msra.mxu1 %v1227_v40  ;;  %2271 = vmatmul.msk.f32.vlgmr.msra.gmra.mxu0 %vm398_vm1, %v998_v32 }
  0xe9   : > { %2274 = vmatmul.msk.f32.vlgmr.msra.gmra.mxu3 %vm398_vm1, %v998_v32  ;;  %2276 = vmatmul.msk.f32.vlgmr.msrb.gmra.mxu1 %vm398_vm1, %v1106_v44 }
  0xea   : > { %2277 = vmatmul.msk.f32.vlgmr.msrb.gmra.mxu2 %vm398_vm1, %v1106_v44  ;;  %1312 = vmatpush.msra.mxu3 %v1229_v45 }
  0xeb   : > { %1252 = vmatpush.msra.mxu0 %v1226_v46 }
  0xf0   : > { %2275 = vmatmul.msk.f32.vlgmr.msrb.gmra.mxu0 %vm398_vm1, %v1106_v44 }
  0xf1   : > { %2278 = vmatmul.msk.f32.vlgmr.msrb.gmra.mxu3 %vm398_vm1, %v1106_v44  ;;  %2280 = vmatmul.msk.f32.vlgmr.msra.gmra.mxu1 %vm398_vm1, %v1214_v47 }
  0xf2   : > { %2281 = vmatmul.msk.f32.vlgmr.msra.gmra.mxu2 %vm398_vm1, %v1214_v47 }
  0xf8   : > { %2279 = vmatmul.msk.f32.vlgmr.msra.gmra.mxu0 %vm398_vm1, %v1214_v47 }
  0xf9   : > { %2282 = vmatmul.msk.f32.vlgmr.msra.gmra.mxu3 %vm398_vm1, %v1214_v47 }
 0x12d   : > { %v439_v48 = vpop.f32.mrf.mxu1 }
 0x130   : > { %v1324_v38 = vpop.permute.xlu0 %1323  ;;  %v1333_v46 = vpop.permute.xlu1 %1332 }
 0x133   : > { %v459_v49 = vpop.f32.mrf.mxu2 }
 0x135   : > { %v419_v50 = vpop.f32.mrf.mxu0 }
 0x136   : > { %v522_v51 = vpop.f32.mrf.mxu1 }
 0x137   : > { %v523_v12 = vadd.f32 %v522_v51, %v439_v48 }
 0x13b   : > { %v479_v52 = vpop.f32.mrf.mxu3 }
 0x13c   : > { %v542_v53 = vpop.f32.mrf.mxu2 }
 0x13d   : > { %v502_v54 = vpop.f32.mrf.mxu0  ;;  %v543_v19 = vadd.f32 %v542_v53, %v459_v49 }
 0x13e   : > { %v626_v55 = vpop.f32.mrf.mxu1  ;;  %v503_v21 = vadd.f32 %v502_v54, %v419_v50  ;;  %v357_v54 = vld [vmem:[%s3148_s1] sm:$0xf] }
 0x13f   : > { %v670_v13 = vadd.f32 %v626_v55, %v523_v12  ;;  %v1346_v12 = vperm.slane %v357_v54, 2 }
 0x143   : > { %v562_v56 = vpop.f32.mrf.mxu3 }
 0x144   : > { %v646_v57 = vpop.f32.mrf.mxu2  ;;  %v563_v33 = vadd.f32 %v562_v56, %v479_v52 }
 0x145   : > { %v606_v58 = vpop.f32.mrf.mxu0  ;;  %v671_v22 = vadd.f32 %v646_v57, %v543_v19 }
 0x146   : > { %v734_v59 = vpop.f32.mrf.mxu1  ;;  %v669_v24 = vadd.f32 %v606_v58, %v503_v21 }
 0x147   : > { %v778_v16 = vadd.f32 %v734_v59, %v670_v13 }
 0x14b   : > { %v666_v60 = vpop.f32.mrf.mxu3 }
 0x14c   : > { %v754_v61 = vpop.f32.mrf.mxu2  ;;  %v672_v39 = vadd.f32 %v666_v60, %v563_v33  ;;  %v1345_v60 = vperm.slane %v357_v54, 1 }
 0x14d   : > { %v714_v62 = vpop.f32.mrf.mxu0  ;;  %v779_v25 = vadd.f32 %v754_v61, %v671_v22 }
 0x14e   : > { %v842_v63 = vpop.f32.mrf.mxu1  ;;  %v777_v28 = vadd.f32 %v714_v62, %v669_v24  ;;  %v1363_v24 = vld [vmem:[#allocation8] sm:$0xff] }
 0x14f   : > { %v886_v20 = vadd.f32 %v842_v63, %v778_v16 }
 0x153   : > { %v774_v3 = vpop.f32.mrf.mxu3 }
 0x154   : > { %v862_v5 = vpop.f32.mrf.mxu2  ;;  %v780_v42 = vadd.f32 %v774_v3, %v672_v39  ;;  %v1344_v3 = vperm.slane %v357_v54, 0 }
 0x155   : > { %v822_v6 = vpop.f32.mrf.mxu0  ;;  %v887_v30 = vadd.f32 %v862_v5, %v779_v25 }
 0x156   : > { %v950_v7 = vpop.f32.mrf.mxu1  ;;  %v885_v34 = vadd.f32 %v822_v6, %v777_v28  ;;  %v1369_v28 = vld [vmem:[#allocation8 + $0x8] sm:$0xff] }
 0x157   : > { %v994_v23 = vadd.f32 %v950_v7, %v886_v20 }
 0x15b   : > { %v882_v8 = vpop.f32.mrf.mxu3 }
 0x15c   : > { %v970_v9 = vpop.f32.mrf.mxu2  ;;  %v888_v48 = vadd.f32 %v882_v8, %v780_v42 }
 0x15d   : > { %v930_v10 = vpop.f32.mrf.mxu0  ;;  %v995_v36 = vadd.f32 %v970_v9, %v887_v30 }
 0x15e   : > { %v1058_v11 = vpop.f32.mrf.mxu1  ;;  %v993_v40 = vadd.f32 %v930_v10, %v885_v34 }
 0x15f   : > { %v1102_v26 = vadd.f32 %v1058_v11, %v994_v23  ;;  %v360_v23 = vld [vmem:[%s3153_s6] sm:$0xff] }
 0x163   : > { %v990_v14 = vpop.f32.mrf.mxu3 }
 0x164   : > { %v1078_v15 = vpop.f32.mrf.mxu2  ;;  %v996_v52 = vadd.f32 %v990_v14, %v888_v48 }
 0x165   : > { %v1038_v17 = vpop.f32.mrf.mxu0  ;;  %v1103_v41 = vadd.f32 %v1078_v15, %v995_v36  ;;  %v1347_v15 = vperm.slane %v357_v54, 3  ;;  %v1597_v54 = vld [vmem:[#allocation8 + $0x18] sm:$0xff] }
 0x166   : > { %v1166_v18 = vpop.f32.mrf.mxu1  ;;  %v1101_v43 = vadd.f32 %v1038_v17, %v993_v40 }
 0x167   : > { %v1210_v31 = vadd.f32 %v1166_v18, %v1102_v26 }
 0x16c   : > { %v1098_v27 = vpop.f32.mrf.mxu3 }
 0x16d   : > { %v1186_v29 = vpop.f32.mrf.mxu2  ;;  %v1146_v32 = vpop.f32.mrf.mxu0  ;;  %v1104_v57 = vadd.f32 %v1098_v27, %v996_v52 }
 0x16e   : > { %v1274_v35 = vpop.f32.mrf.mxu1  ;;  %v1211_v45 = vadd.f32 %v1186_v29, %v1103_v41  ;;  %v1209_v49 = vadd.f32 %v1146_v32, %v1101_v43  ;;  %v1515_v32 = vld [vmem:[#allocation8 + $0x10] sm:$0xff] }
 0x16f   : > { %v1318_v37 = vadd.f32 %v1274_v35, %v1210_v31 }
 0x171   : > { %v1327_v44 = vmul.f32 %v1324_v38, %v1318_v37 }
 0x173   : > { %v1336_v55 = vadd.f32 %v1333_v46, %v1327_v44 }
 0x174   : > { %v1206_v47 = vpop.f32.mrf.mxu3 }
 0x175   : > { %v1294_v50 = vpop.f32.mrf.mxu2  ;;  %v1254_v53 = vpop.f32.mrf.mxu0  ;;  %v1340_v61 = vmax.f32 %v1336_v55, 0.0  ;;  %v1212_v62 = vadd.f32 %v1206_v47, %v1104_v57 }
 0x176   : > { %v1319_v51 = vadd.f32 %v1294_v50, %v1211_v45  ;;  %v1317_v56 = vadd.f32 %v1254_v53, %v1209_v49 }
 0x177   : > { %v1353_v9 = vmul.f32 %v1345_v60, %v1340_v61 }
 0x178   : > { %v1328_v58 = vmul.f32 %v1324_v38, %v1319_v51  ;;  %v1326_v59 = vmul.f32 %v1324_v38, %v1317_v56 }
 0x17a   : > { %v1335_v63 = vadd.f32 %v1333_v46, %v1326_v59  ;;  %v1337_v6 = vadd.f32 %v1333_v46, %v1328_v58 }
 0x17c   : > { %v1314_v5 = vpop.f32.mrf.mxu3  ;;  %v1339_v7 = vmax.f32 %v1335_v63, 0.0  ;;  %v1341_v13 = vmax.f32 %v1337_v6, 0.0  ;;  %v1679_v6 = vld [vmem:[#allocation8 + $0x20] sm:$0xff] }
 0x17d   : > { %v1320_v8 = vadd.f32 %v1314_v5, %v1212_v62 }
 0x17e   : > { %v1352_v10 = vmul.f32 %v1344_v3, %v1339_v7  ;;  %v1354_v18 = vmul.f32 %v1346_v12, %v1341_v13  ;;  %v1761_v13 = vld [vmem:[#allocation8 + $0x28] sm:$0xff] }
 0x17f   : > { %v1329_v11 = vmul.f32 %v1324_v38, %v1320_v8  ;;  %v361_v8 = vld [vmem:[%s3154_s7] sm:$0xff] }
 0x180   : > { %1469 = vmatpush.msrb.mxu3 %v1352_v10  ;;  %v2478_v16 = vpack.i.bf16 %v1353_v9, %v1352_v10  ;;  %v2498_v21 = vpack.i.bf16 %v1354_v18, %v1353_v9 }
 0x181   : > { %v1338_v14 = vadd.f32 %v1333_v46, %v1329_v11  ;;  %2286 = vmatmul.msk.f32.vlgmr.msrb.gmra.mxu3 %vm398_vm1, %v1363_v24 }
 0x182   : > { %2479 = vrot.lane.b32.xlu1 %v2478_v16, %s2725_s2 }
 0x183   : > { %v1342_v17 = vmax.f32 %v1338_v14, 0.0 }
 0x185   : > { %v1355_v19 = vmul.f32 %v1347_v15, %v1342_v17 }
 0x187   : > { %v2493_v20 = vpack.i.bf16 %v1355_v19, %v1354_v18  ;;  %v2508_v22 = vpack.i.bf16 %v1355_v19, %v1352_v10 }
 0x189   : > { %2494 = vrot.lane.b32.xlu0 %v2493_v20, %s2726_s3  ;;  %2484 = vrot.lane.b32.xlu2 %v2493_v20, %s2725_s2 }
 0x18a   : > { %2499 = vrot.lane.b32.xlu1 %v2498_v21, %s2727_s13 }
 0x191   : > { %2519 = vrot.lane.b32.xlu0 %v2493_v20, %s2728_s10  ;;  %2489 = vrot.lane.b32.xlu2 %v2478_v16, %s2726_s3 }
 0x192   : > { %2504 = vrot.lane.b32.xlu1 %v2478_v16, %s2728_s10  ;;  %s2317_s10 = smul.u32 24, %s2803_s12 }
 0x199   : > { %2524 = vrot.lane.b32.xlu0 %v2478_v16, %s2730_s21  ;;  %2509 = vrot.lane.b32.xlu2 %v2508_v22, %s2727_s13  ;;  %s2316_s13 = smul.u32 24, %s2873_s11 }
 0x19a   : > { %2529 = vrot.lane.b32.xlu1 %v2493_v20, %s2729_s18 }
 0x19b   : > { %s356_s12 = scalar_lea.vmem [#allocation9], %s2316_s13 }
 0x1a1   : > { %2539 = vrot.lane.b32.xlu0 %v2498_v21, %s2731_s22  ;;  %2514 = vrot.lane.b32.xlu2 %v2478_v16, %s2729_s18 }
 0x1a2   : > { %2544 = vrot.lane.b32.xlu1 %v2508_v22, %s2731_s22  ;;  %v1843_v22 = vld [vmem:[#allocation8 + $0x30] sm:$0xff]  ;;  %s2144_s22 = scalar_lea.hbm %s3155_s8, %s2317_s10 }
 0x1a3   : > { %s2148_s25 = sshll.u32 %s2144_s22, 4  ;;  %s2149_s25 = int_to_ptr.hbm [resolvable:$true] %s2148_s25 }
 0x1a4   : > { %s2663_s19 = sshra.s32 %s2149_s25, 4  ;;  %s2664_s19 = int_to_ptr.hbm [resolvable:$true] %s2663_s19 }
 0x1a5   : > { %s2665_s20 = scalar_lea.hbm %s2664_s19, 24  ;;  %p2670_p12 = scmp.lt.s32.totalorder %s2664_s19, %s3155_s8 }
 0x1a6   : > { %p2666_p1 = scmp.ne.s32.totalorder %s2664_s19, %s2665_s20  ;;  %p2671_p7 = scmp.lt.s32.totalorder %s2669_s9, %s2665_s20 }
 0x1a8   : > { %p2667_p3 = pnand %p2666_p1, %p2844_p4  ;;  %p2672_p8 = por %p2671_p7, %p2670_p12 }
 0x1a9   : > { %2554 = vrot.lane.b32.xlu0 %v2478_v16, %s2732_s23  ;;  %2534 = vrot.lane.b32.xlu2 %v2493_v20, %s2730_s21 }
 0x1aa   : > { %2094 = vperm.xlu1 %2477, %v360_v23   ;;  %p2668_p5 = pneg %p2667_p3 }
 0x1ac   : > { %p2673_p9 = pnand %p2672_p8, %p2668_p5 }
 0x1b1   : > { %2549 = vrot.lane.b32.xlu2 %v2493_v20, %s2732_s23  ;;  %2112 = vrot.lane.b32.xlu0 %v2895_v4, %s2732_s23 }
 0x1b2   : > { %2114 = vrot.lane.b32.xlu1 %v2889_v2, %s2732_s23 }
 0x1b9   : > { %2118 = vrot.lane.b32.xlu0 %v2887_v1, %s2732_s23  ;;  %2102 = vperm.xlu2 %2558, %v361_v8  }
 0x1c1   : > { %2116 = vrot.lane.b32.xlu2 %v2885_v0, %s2732_s23  ;;  %s2146_s23 = sshll.u32 %s356_s12, 4  ;;  %s2147_s23 = int_to_ptr.vmem [resolvable:$true] %s2146_s23 }
 0x1e3   : > { %v2485_v25 = vpop.permute.xlu2 %2484 }
 0x1e4   : > { %v2487_v26 = vunpack.i.h.bf16 %v2485_v25  ;;  %v2486_v27 = vunpack.i.l.bf16 %v2485_v25 }
 0x1e6   : > { %v1384_v29 = vsel %vm389_vm0, %v2486_v27, %v2487_v26 }
 0x1e7   : > { %1446 = vmatpush.msrb.mxu2 %v1384_v29 }
 0x1e8   : > { %2285 = vmatmul.msk.f32.vlgmr.msrb.gmra.mxu2 %vm398_vm1, %v1369_v28 }
 0x1eb   : > { %v2490_v30 = vpop.permute.xlu2 %2489 }
 0x1ec   : > { %v2492_v4 = vunpack.i.h.bf16 %v2490_v30  ;;  %v2491_v31 = vunpack.i.l.bf16 %v2490_v30 }
 0x1ee   : > { %v1524_v2 = vsel %vm577_vm2, %v2491_v31, %v2492_v4 }
 0x1ef   : > { %1548 = vmatpush.msra.mxu2 %v1524_v2 }
 0x1f0   : > { %2289 = vmatmul.msk.f32.vlgmr.msra.gmra.mxu2 %vm398_vm1, %v1515_v32 }
 0x1f3   : > { %v2510_v1 = vpop.permute.xlu2 %2509 }
 0x1f4   : > { %v2480_v33 = vpop.permute.xlu1 %2479  ;;  %v2512_v42 = vunpack.i.h.bf16 %v2510_v1  ;;  %v2511_v43 = vunpack.i.l.bf16 %v2510_v1 }
 0x1f5   : > { %v2482_v34 = vunpack.i.h.bf16 %v2480_v33  ;;  %v2481_v35 = vunpack.i.l.bf16 %v2480_v33  ;;  %v1925_v33 = vld [vmem:[#allocation8 + $0x38] sm:$0xff] }
 0x1f7   : > { %v1382_v36 = vsel %vm389_vm0, %v2481_v35, %v2482_v34  ;;  %v1383_v37 = vsel %vm389_vm0, %v2482_v34, %v2486_v27 }
 0x1f8   : > { %1406 = vmatpush.msrb.mxu0 %v1382_v36  ;;  %1426 = vmatpush.msrb.mxu1 %v1383_v37 }
 0x1f9   : > { %2283 = vmatmul.msk.f32.vlgmr.msrb.gmra.mxu0 %vm398_vm1, %v1369_v28  ;;  %2284 = vmatmul.msk.f32.vlgmr.msrb.gmra.mxu1 %vm398_vm1, %v1369_v28 }
 0x1fa   : > { %1489 = vmatpush.msra.mxu0 %v1353_v9  ;;  %1509 = vmatpush.msra.mxu1 %v1354_v18 }
 0x1fb   : > { %v2495_v38 = vpop.permute.xlu0 %2494  ;;  %v2515_v41 = vpop.permute.xlu2 %2514 }
 0x1fc   : > { %v2497_v39 = vunpack.i.h.bf16 %v2495_v38  ;;  %v2496_v40 = vunpack.i.l.bf16 %v2495_v38  ;;  %v2500_v44 = vpop.permute.xlu1 %2499  ;;  %v2517_v49 = vunpack.i.h.bf16 %v2515_v41  ;;  %v2516_v50 = vunpack.i.l.bf16 %v2515_v41  ;;  %v2007_v38 = vld [vmem:[#allocation8 + $0x40] sm:$0xff] }
 0x1fd   : > { %v2502_v45 = vunpack.i.h.bf16 %v2500_v44  ;;  %v2501_v46 = vunpack.i.l.bf16 %v2500_v44 }
 0x1fe   : > { %v1525_v47 = vsel %vm577_vm2, %v2492_v4, %v2496_v40  ;;  %v1526_v48 = vsel %vm577_vm2, %v2496_v40, %v2497_v39  ;;  %v1770_v55 = vsel %vm901_vm5, %v2516_v50, %v2517_v49 }
 0x1ff   : > { %1568 = vmatpush.msra.mxu3 %v1525_v47  ;;  %1588 = vmatpush.msrb.mxu0 %v1526_v48  ;;  %v1606_v51 = vsel %vm685_vm3, %v2511_v43, %v2501_v46  ;;  %v1607_v53 = vsel %vm685_vm3, %v2501_v46, %v2502_v45  ;;  %v1608_v52 = vsel %vm685_vm3, %v2502_v45, %v2512_v42 }
 0x200   : > { %2290 = vmatmul.msk.f32.vlgmr.msra.gmra.mxu3 %vm398_vm1, %v1515_v32  ;;  %1630 = vmatpush.msrb.mxu1 %v1606_v51 }
 0x201   : > { %1650 = vmatpush.msrb.mxu2 %v1607_v53  ;;  %1670 = vmatpush.msrb.mxu3 %v1608_v52 }
 0x202   : > { %2287 = vmatmul.msk.f32.vlgmr.msra.gmra.mxu0 %vm398_vm1, %v1363_v24  ;;  %2288 = vmatmul.msk.f32.vlgmr.msra.gmra.mxu1 %vm398_vm1, %v1363_v24 }
 0x203   : > { %2293 = vmatmul.msk.f32.vlgmr.msrb.gmra.mxu2 %vm398_vm1, %v1597_v54  ;;  %v2520_v56 = vpop.permute.xlu0 %2519  ;;  %1794 = vmatpush.msra.mxu3 %v1770_v55  ;;  %v2535_v60 = vpop.permute.xlu2 %2534 }
 0x204   : > { %v2522_v57 = vunpack.i.h.bf16 %v2520_v56  ;;  %v2521_v58 = vunpack.i.l.bf16 %v2520_v56  ;;  %v2505_v59 = vpop.permute.xlu1 %2504  ;;  %v2536_v9 = vunpack.i.l.bf16 %v2535_v60  ;;  %v2537_v18 = vunpack.i.h.bf16 %v2535_v60  ;;  %v1471_v42 = vpop.f32.mrf.mxu3 }
 0x205   : > { %v2507_v61 = vunpack.i.h.bf16 %v2505_v59  ;;  %v2506_v62 = vunpack.i.l.bf16 %v2505_v59 }
 0x206   : > { %v1690_v63 = vsel %vm793_vm4, %v2521_v58, %v2522_v57  ;;  %v1854_v25 = vsel %vm1009_vm6, %v2536_v9, %v2537_v18 }
 0x207   : > { %1752 = vmatpush.msra.mxu2 %v1690_v63  ;;  %v1688_v3 = vsel %vm793_vm4, %v2506_v62, %v2507_v61  ;;  %v1689_v5 = vsel %vm793_vm4, %v2507_v61, %v2521_v58 }
 0x208   : > { %2294 = vmatmul.msk.f32.vlgmr.msrb.gmra.mxu3 %vm398_vm1, %v1597_v54  ;;  %1712 = vmatpush.msra.mxu0 %v1688_v3 }
 0x209   : > { %1732 = vmatpush.msra.mxu1 %v1689_v5 }
 0x20a   : > { %2291 = vmatmul.msk.f32.vlgmr.msrb.gmra.mxu0 %vm398_vm1, %v1515_v32  ;;  %2292 = vmatmul.msk.f32.vlgmr.msrb.gmra.mxu1 %vm398_vm1, %v1597_v54 }
 0x20b   : > { %2297 = vmatmul.msk.f32.vlgmr.msra.gmra.mxu2 %vm398_vm1, %v1679_v6  ;;  %v2525_v7 = vpop.permute.xlu0 %2524  ;;  %v2550_v19 = vpop.permute.xlu2 %2549 }
 0x20c   : > { %v2527_v10 = vunpack.i.h.bf16 %v2525_v7  ;;  %v2526_v11 = vunpack.i.l.bf16 %v2525_v7  ;;  %v2530_v12 = vpop.permute.xlu1 %2529  ;;  %v2552_v23 = vunpack.i.h.bf16 %v2550_v19  ;;  %v2551_v24 = vunpack.i.l.bf16 %v2550_v19 }
 0x20d   : > { %v2532_v14 = vunpack.i.h.bf16 %v2530_v12  ;;  %v2531_v15 = vunpack.i.l.bf16 %v2530_v12 }
 0x20e   : > { %v1852_v16 = vsel %vm1009_vm6, %v2526_v11, %v2527_v10  ;;  %v1853_v17 = vsel %vm1009_vm6, %v2527_v10, %v2536_v9  ;;  %v2018_v32 = vsel %vm1225_vm8, %v2551_v24, %v2552_v23 }
 0x20f   : > { %1876 = vmatpush.msrb.mxu2 %v1852_v16  ;;  %1896 = vmatpush.msrb.mxu3 %v1853_v17  ;;  %v1771_v20 = vsel %vm901_vm5, %v2517_v49, %v2531_v15  ;;  %v1772_v21 = vsel %vm901_vm5, %v2531_v15, %v2532_v14 }
 0x210   : > { %2298 = vmatmul.msk.f32.vlgmr.msra.gmra.mxu3 %vm398_vm1, %v1761_v13  ;;  %1814 = vmatpush.msrb.mxu0 %v1771_v20 }
 0x211   : > { %1834 = vmatpush.msrb.mxu1 %v1772_v21 }
 0x212   : > { %2295 = vmatmul.msk.f32.vlgmr.msra.gmra.mxu0 %vm398_vm1, %v1679_v6  ;;  %2296 = vmatmul.msk.f32.vlgmr.msra.gmra.mxu1 %vm398_vm1, %v1679_v6 }
 0x213   : > { %2301 = vmatmul.msk.f32.vlgmr.msrb.gmra.mxu2 %vm398_vm1, %v1843_v22  ;;  %v2540_v26 = vpop.permute.xlu0 %2539  ;;  %1916 = vmatpush.msra.mxu0 %v1854_v25  ;;  %v2103_v9 = vpop.permute.xlu2 %2102 }
 0x214   : > { %v2542_v27 = vunpack.i.h.bf16 %v2540_v26  ;;  %v2541_v28 = vunpack.i.l.bf16 %v2540_v26  ;;  %v2545_v29 = vpop.permute.xlu1 %2544 }
 0x215   : > { %v2547_v30 = vunpack.i.h.bf16 %v2545_v29  ;;  %v2546_v4 = vunpack.i.l.bf16 %v2545_v29 }
 0x216   : > { %v1935_v31 = vsel %vm1117_vm7, %v2541_v28, %v2542_v27 }
 0x217   : > { %1978 = vmatpush.msra.mxu2 %v1935_v31  ;;  %v1934_v2 = vsel %vm1117_vm7, %v2546_v4, %v2541_v28  ;;  %v1936_v1 = vsel %vm1117_vm7, %v2542_v27, %v2547_v30 }
 0x218   : > { %2302 = vmatmul.msk.f32.vlgmr.msrb.gmra.mxu3 %vm398_vm1, %v1843_v22  ;;  %1958 = vmatpush.msra.mxu1 %v1934_v2 }
 0x219   : > { %2080 = vmatpush.msrb.mxu2 %v2018_v32  ;;  %1998 = vmatpush.msra.mxu3 %v1936_v1 }
 0x21a   : > { %2299 = vmatmul.msk.f32.vlgmr.msrb.gmra.mxu0 %vm398_vm1, %v1761_v13  ;;  %2300 = vmatmul.msk.f32.vlgmr.msrb.gmra.mxu1 %vm398_vm1, %v1761_v13 }
 0x21b   : > { %2305 = vmatmul.msk.f32.vlgmr.msra.gmra.mxu2 %vm398_vm1, %v1925_v33  ;;  %v2555_v0 = vpop.permute.xlu0 %2554  ;;  %v2117_v4 = vpop.permute.xlu2 %2116 }
 0x21c   : > { %v2557_v34 = vunpack.i.h.bf16 %v2555_v0  ;;  %v2556_v35 = vunpack.i.l.bf16 %v2555_v0  ;;  %v2095_v19 = vpop.permute.xlu1 %2094 }
 0x21e   : > { %v2016_v36 = vsel %vm1225_vm8, %v2556_v35, %v2557_v34  ;;  %v2017_v37 = vsel %vm1225_vm8, %v2557_v34, %v2551_v24 }
 0x21f   : > { %2040 = vmatpush.msrb.mxu0 %v2016_v36  ;;  %2060 = vmatpush.msrb.mxu1 %v2017_v37 }
 0x220   : > { %2306 = vmatmul.msk.f32.vlgmr.msra.gmra.mxu3 %vm398_vm1, %v1925_v33 }
 0x222   : > { %2303 = vmatmul.msk.f32.vlgmr.msra.gmra.mxu0 %vm398_vm1, %v1843_v22  ;;  %2304 = vmatmul.msk.f32.vlgmr.msra.gmra.mxu1 %vm398_vm1, %v1925_v33 }
 0x223   : > { %2309 = vmatmul.msk.f32.vlgmr.msrb.gmra.mxu2 %vm398_vm1, %v2007_v38  ;;  %v2113_v7 = vpop.permute.xlu0 %2112 }
 0x224   : > { %v2115_v34 = vpop.permute.xlu1 %2114 }
 0x22a   : > { %2307 = vmatmul.msk.f32.vlgmr.msrb.gmra.mxu0 %vm398_vm1, %v2007_v38  ;;  %2308 = vmatmul.msk.f32.vlgmr.msrb.gmra.mxu1 %vm398_vm1, %v2007_v38  ;;  %v2121_v38 = vsel %vm1225_vm8, %v2115_v34, %v2117_v4 }
 0x22b   : > { %v2119_v27 = vpop.permute.xlu0 %2118 }
 0x22c   : > { %v2122_v0 = vsel %vm1225_vm8, %v2117_v4, %v2119_v27 }
 0x26b   : > { %v1448_v39 = vpop.f32.mrf.mxu2 }
 0x273   : > { %v1550_v43 = vpop.f32.mrf.mxu2 }
 0x276   : > { %v1408_v40 = vpop.f32.mrf.mxu0  ;;  %v1428_v41 = vpop.f32.mrf.mxu1 }
 0x277   : > { %v1472_v55 = vadd.f32 %v1471_v42, %v1408_v40 }
 0x279   : > { %v1593_v63 = vadd.f32 %v1550_v43, %v1472_v55 }
 0x27f   : > { %v1491_v44 = vpop.f32.mrf.mxu0  ;;  %v1511_v45 = vpop.f32.mrf.mxu1 }
 0x280   : > { %v1512_v56 = vadd.f32 %v1511_v45, %v1448_v39  ;;  %v1492_v58 = vadd.f32 %v1491_v44, %v1428_v41  ;;  %v2120_v41 = vsel %vm1225_vm8, %v2113_v7, %v2115_v34 }
 0x283   : > { %v1570_v46 = vpop.f32.mrf.mxu3 }
 0x284   : > { %v1594_v62 = vadd.f32 %v1570_v46, %v1492_v58 }
 0x286   : > { %v1652_v47 = vpop.f32.mrf.mxu2 }
 0x287   : > { %v1590_v48 = vpop.f32.mrf.mxu0  ;;  %v1632_v49 = vpop.f32.mrf.mxu1  ;;  %v1676_v8 = vadd.f32 %v1652_v47, %v1594_v62 }
 0x288   : > { %v1595_v60 = vadd.f32 %v1590_v48, %v1512_v56  ;;  %v1675_v6 = vadd.f32 %v1632_v49, %v1593_v63 }
 0x28b   : > { %v1672_v50 = vpop.f32.mrf.mxu3 }
 0x28c   : > { %v1677_v3 = vadd.f32 %v1672_v50, %v1595_v60 }
 0x28e   : > { %v1754_v51 = vpop.f32.mrf.mxu2 }
 0x28f   : > { %v1714_v53 = vpop.f32.mrf.mxu0  ;;  %v1734_v52 = vpop.f32.mrf.mxu1  ;;  %v1759_v10 = vadd.f32 %v1754_v51, %v1677_v3 }
 0x290   : > { %v1757_v11 = vadd.f32 %v1714_v53, %v1675_v6  ;;  %v1758_v13 = vadd.f32 %v1734_v52, %v1676_v8 }
 0x293   : > { %v1796_v54 = vpop.f32.mrf.mxu3 }
 0x294   : > { %v1839_v15 = vadd.f32 %v1796_v54, %v1757_v11 }
 0x296   : > { %v1878_v57 = vpop.f32.mrf.mxu2 }
 0x297   : > { %v1816_v59 = vpop.f32.mrf.mxu0  ;;  %v1836_v61 = vpop.f32.mrf.mxu1  ;;  %v1921_v23 = vadd.f32 %v1878_v57, %v1839_v15 }
 0x298   : > { %v1841_v16 = vadd.f32 %v1836_v61, %v1759_v10  ;;  %v1840_v18 = vadd.f32 %v1816_v59, %v1758_v13 }
 0x29b   : > { %v1898_v5 = vpop.f32.mrf.mxu3 }
 0x29c   : > { %v1922_v21 = vadd.f32 %v1898_v5, %v1840_v18 }
 0x29e   : > { %v1980_v12 = vpop.f32.mrf.mxu2 }
 0x29f   : > { %v1918_v14 = vpop.f32.mrf.mxu0  ;;  %v1960_v17 = vpop.f32.mrf.mxu1  ;;  %v2004_v28 = vadd.f32 %v1980_v12, %v1922_v21 }
 0x2a0   : > { %v1923_v20 = vadd.f32 %v1918_v14, %v1841_v16  ;;  %v2003_v25 = vadd.f32 %v1960_v17, %v1921_v23 }
 0x2a3   : > { %v2000_v22 = vpop.f32.mrf.mxu3 }
 0x2a4   : > { %v2005_v24 = vadd.f32 %v2000_v22, %v1923_v20 }
 0x2a6   : > { %v2082_v26 = vpop.f32.mrf.mxu2 }
 0x2a7   : > { %v2087_v29 = vadd.f32 %v2082_v26, %v2005_v24  ;;  %v2042_v30 = vpop.f32.mrf.mxu0  ;;  %v2062_v32 = vpop.f32.mrf.mxu1 }
 0x2a8   : > { %v2085_v31 = vadd.f32 %v2042_v30, %v2003_v25  ;;  %v2086_v1 = vadd.f32 %v2062_v32, %v2004_v28 }
 0x2a9   : > { %v2099_v2 = vmul.f32 %v2095_v19, %v2087_v29 }
 0x2aa   : > { %v2097_v33 = vmul.f32 %v2095_v19, %v2085_v31  ;;  %v2098_v36 = vmul.f32 %v2095_v19, %v2086_v1 }
 0x2ab   : > { %v2107_v35 = vadd.f32 %v2103_v9, %v2099_v2 }
 0x2ac   : > { %v2105_v37 = vadd.f32 %v2103_v9, %v2097_v33  ;;  %v2106_v39 = vadd.f32 %v2103_v9, %v2098_v36 }
 0x2ad   : > { %v2128_v40 = vadd.f32 %v2122_v0, %v2107_v35 }
 0x2ae   : > { %v2126_v42 = vadd.f32 %v2120_v41, %v2105_v37  ;;  %v2127_v43 = vadd.f32 %v2121_v38, %v2106_v39 }
 0x2af   : > { %2131 = vst [vmem:[%s356_s12 + $0x10] sm:$0xff] %v2128_v40 }
 0x2b0   : > { %2129 = vst [vmem:[%s356_s12] sm:$0xff] %v2126_v42 }
 0x2b1   : > { %2130 = vst [vmem:[%s356_s12 + $0x8] sm:$0xff] %v2127_v43 }
 0x2b2   : > { %2676 = shalt.err (!%p2673_p9)
}
 0x2b3   : > { %2328 = dma.vmem_to_hbm [thread:$0]  (%p2844_p4), %s2147_s23, 384, %s2149_s25, %s2133_s26  }
 0x2b4 PF: > { %s2160_s11 = sand.u32 1, %s2707_s27   ;;  %p3168_p10 = scmp.ge.s32.totalorder %s2719_s30, 2 }
 0x2b5   : > { %s2161_s3 = scalar_lea.sflag [#allocation5], %s2160_s11 }
 0x2b6   : > { %p2342_p11 = pnand %p3168_p10, %p2848_p6 }
 0x2b8   : > { %p2343_p13 = pneg %p2342_p11 }
 0x2ba   : > { %2702 = dma.done.wait (%p2343_p13), %s2161_s3, 384  }
 0x2bb   : > { %2704 = vsyncadd (%p2343_p13), %s2161_s3, 4294966912  ;;  %s3169_s13 = sld [smem:[#allocation13_spill]]  ;;  %p22_p0 = scmp.ge.s32.totalorder %s2822_s24, 4  }
 0x2bc   : > { %s3170_s29 = sld [smem:[#allocation14_spill]]  ;;  %s3171_s27 = smov %s2711_s28 }
 0x2bd   : > { %s3173_s30 = smov %s2822_s24  ;;  %24 = sbr.rel (!%p22_p0) target bundleno = 9 (0x9), region = 121 }
 0x2c1   : > { %s3172_s28 = smov %s3169_s13 }
 0x2c2   :  { %2167 = vsyncpa [#allocation4], 1 }
 0x2c3   :  { %2169 = vsyncpa [#allocation4 + $0x1], 1 }
 0x2c4   :  { %2170 = vsyncpa [#allocation7], 1 }
 0x2c5   :  { %2171 = vsyncpa [#allocation5], 1 }
 0x2c6   :  { %2173 = vsyncpa [#allocation5 + $0x1], 1 }

</bundles_post_ra>
